<compile_context>
chip_gen: v7x
topology: tpu7x:2x2x1
jax: 0.10.0
libtpu: 0.0.40
codegen_flags: <defaults>
</compile_context>

<pallas_src>
import functools
import math

import jax
import jax.numpy as jnp
from jax.experimental import pallas as pl
from jax.experimental.pallas import tpu as pltpu


def _round_up(n, m):
    return ((n + m - 1) // m) * m


@functools.lru_cache(maxsize=1)
def _vmem_config():
    """(vmem_limit_bytes, planning_budget_bytes) chosen per TPU generation."""
    try:
        cap = int(getattr(pltpu.get_tpu_info(), "vmem_capacity_bytes", 0))
    except Exception:
        cap = 0
    if cap and cap <= 64 * 1024 * 1024:        # v7x-class: 64 MiB physical VMEM
        limit = 48 * 1024 * 1024
    elif cap:                                   # v5e / v6e: 128 MiB physical VMEM
        limit = 100 * 1024 * 1024
    else:                                       # unknown: stay conservative
        limit = 32 * 1024 * 1024
    return limit, int(limit * 0.85)


def _fused_fits(n, f, budget):
    # adj f32 + att bf16 + ~3 live (N,N) f32 softmax temps + a few (N,F) f32 carries
    return (18 * n * n + 24 * n * f + (1 << 20)) <= budget


def _choose_tm(n, budget, block_rows):
    tm = max(16, (min(block_rows, 512) // 16) * 16)
    while tm > 16:
        npad = _round_up(n, max(tm, 128))
        # adj f32 x2 buffers + att bf16 x2 buffers + ~3 f32 temps per row tile
        if tm * npad * 24 <= budget:
            break
        tm //= 2
    return max(tm, 16)


def _choose_tk(npad, tm, f, budget):
    def cost(tk):
        # att bf16 x2 buf + update bf16 x2 buf + (tm,F) blocks + acc scratch + slack
        return 4 * tm * tk + 4 * tk * f + 10 * tm * f * 4 + (2 << 20)

    if cost(npad) <= budget:
        return npad
    cap = ((budget // (4 * tm + 4 * f)) // 128) * 128
    tk = max(128, min(npad, cap))
    while tk > 128 and (npad % tk != 0 or cost(tk) > budget):
        tk -= 128
    return max(tk, 128)


# --------------------------------------------------------------------------- kernels
def _attention_kernel(f1_ref, f2_ref, adj_ref, att_ref, rowsum_ref, *, alpha):
    # f1_ref: (TM, 1) f32   row-tiled X@wa[:,0]
    # f2_ref: (1, N)  f32   resident X@wa[:,1] (lane-major row)
    # adj_ref: (TM, N) f32  adjacency row tile (0 off-edge, no self loops)
    # att_ref: (TM, N) bf16 output attention row tile
    # rowsum_ref: (TM, 1) f32 output 0.5 * sum_j adj*att
    adj = adj_ref[...]
    mask = adj != 0.0
    e = f1_ref[...] + f2_ref[...]                               # (TM, N)
    e = jnp.maximum(e, alpha * e)                               # LeakyReLU, alpha in (0,1)
    e_m = jnp.where(mask, e, jnp.float32(-1e30))
    # row_max clamped >= 0 so masked entries underflow to exactly 0 in exp below.
    row_max = jnp.maximum(jnp.max(e_m, axis=1, keepdims=True), 0.0)
    p = jnp.exp(e_m - row_max)
    denom = jnp.sum(p, axis=1, keepdims=True)
    inv = pl.reciprocal(jnp.where(denom > 0.0, denom, jnp.float32(1.0)), approx=True)
    att = p * inv                                               # zeros off-edge / empty rows
    rowsum_ref[...] = 0.5 * jnp.sum(adj * att, axis=1, keepdims=True)
    att_ref[...] = att.astype(jnp.bfloat16)


def _hop_kernel(scal_ref, att_ref, upd_ref, x_ref, rs_ref, prev_ref,
                upd_out_ref, fp_out_ref, acc_ref):
    # scal_ref: SMEM (3,)   [coe0, w_prev, w_odd]
    # att_ref:  (TM, TK) bf16; upd_ref: (TK, F) bf16; x_ref/prev_ref: (TM, F) f32
    # rs_ref:   (TM, 1) f32; upd_out_ref: (TM, F) bf16; fp_out_ref: (TM, F) f32
    # acc_ref:  VMEM scratch (TM, F) f32 accumulator
    k = pl.program_id(1)

    @pl.when(k == 0)
    def _init():
        acc_ref[...] = jnp.zeros_like(acc_ref)

    acc_ref[...] += jnp.dot(att_ref[...], upd_ref[...],
                            preferred_element_type=jnp.float32)

    @pl.when(k == pl.num_programs(1) - 1)
    def _finish():
        coe0 = scal_ref[0]
        w_prev = scal_ref[1]
        w_odd = scal_ref[2]
        upd = acc_ref[...]
        feat_even = coe0 * x_ref[...] + upd
        feat_odd = upd - feat_even * rs_ref[...]
        fp_out_ref[...] = w_prev * prev_ref[...] + w_odd * feat_odd
        upd_out_ref[...] = upd.astype(jnp.bfloat16)


def _fused_kernel(scal_ref, adj_ref, f1_ref, f2_ref, x_ref, out_ref, *, hop, alpha):
    # Whole-graph fused path: attention + all hop steps with att resident in VMEM.
    adj = adj_ref[...]
    mask = adj != 0.0
    e = f1_ref[...] + f2_ref[...]
    e = jnp.maximum(e, alpha * e)
    e_m = jnp.where(mask, e, jnp.float32(-1e30))
    row_max = jnp.maximum(jnp.max(e_m, axis=1, keepdims=True), 0.0)
    p = jnp.exp(e_m - row_max)
    denom = jnp.sum(p, axis=1, keepdims=True)
    inv = pl.reciprocal(jnp.where(denom > 0.0, denom, jnp.float32(1.0)), approx=True)
    att = p * inv
    rowsum = 0.5 * jnp.sum(adj * att, axis=1, keepdims=True)
    att_bf = att.astype(jnp.bfloat16)

    coe0 = scal_ref[0]
    coe2 = scal_ref[1]
    x = x_ref[...]
    update = x
    feat_prime = jnp.zeros_like(x)
    for step in range(hop):                                     # hop is static -> unrolled
        update = jnp.dot(att_bf, update.astype(jnp.bfloat16),
                         preferred_element_type=jnp.float32)
        feat_even = coe0 * x + update
        feat_odd = update - feat_even * rowsum
        if step == 0:
            feat_prime = feat_odd
        else:
            feat_prime = coe2 * feat_prime + (1.0 - coe2) * feat_odd
    out_ref[...] = feat_prime


# --------------------------------------------------------------------------- wrapper
@functools.partial(jax.jit,
                   static_argnames=("hop", "alpha", "block_rows", "force_tiled"))
def noflayer_forward(x, adj_dense, w_att, a_param, temp, *, hop, alpha=0.2,
                     block_rows=256, force_tiled=False):
    """x: (N, F) f32; adj_dense: (N, N) f32 (0 off-edge, no self loops);
       w_att: (F, F); a_param: (2F, 1); temp: (4,)."""
    N, F = x.shape
    x = x.astype(jnp.float32)
    adj = adj_dense.astype(jnp.float32)

    # Parameter-only precompute: (X@W)@a == X@(W@a); f = X@wa is grid-invariant so it
    # is computed once here (tiny XLA matmul) instead of per row tile in the kernel.
    a_mat = jnp.concatenate([a_param[:F, :], a_param[F:, :]], axis=1)        # (F, 2)
    wa = jnp.dot(w_att.astype(jnp.float32), a_mat.astype(jnp.float32))       # (F, 2)
    f = jnp.dot(x, wa)                                                       # (N, 2)
    coe = jax.nn.sigmoid(temp.astype(jnp.float32))

    vmem_limit, budget = _vmem_config()

    # ---- fused path: att/rowsum never touch HBM; all hops in one pallas_call ----
    if not force_tiled and _fused_fits(N, F, budget):
        scal = jnp.stack([coe[0], coe[2]])
        f1 = f[:, 0:1]
        f2 = f[:, 1:2].reshape(1, N)
        return pl.pallas_call(
            functools.partial(_fused_kernel, hop=hop, alpha=alpha),
            out_shape=jax.ShapeDtypeStruct((N, F), jnp.float32),
            in_specs=[
                pl.BlockSpec(memory_space=pltpu.MemorySpace.SMEM),    # [coe0, coe2]
                pl.BlockSpec(memory_space=pltpu.MemorySpace.VMEM),    # adj (N, N)
                pl.BlockSpec(memory_space=pltpu.MemorySpace.VMEM),    # f1  (N, 1)
                pl.BlockSpec(memory_space=pltpu.MemorySpace.VMEM),    # f2  (1, N)
                pl.BlockSpec(memory_space=pltpu.MemorySpace.VMEM),    # x   (N, F)
            ],
            out_specs=pl.BlockSpec(memory_space=pltpu.MemorySpace.VMEM),
            compiler_params=pltpu.CompilerParams(vmem_limit_bytes=vmem_limit),
        )(scal, adj, f1, f2, x)

    # ---- tiled path (large graphs): pad N to a tile multiple (no tm=N fallback) ----
    tm = _choose_tm(N, budget, block_rows)
    Np = _round_up(N, max(tm, 128))
    if Np != N:
        pad = Np - N
        adj = jnp.pad(adj, ((0, pad), (0, pad)))
        x_p = jnp.pad(x, ((0, pad), (0, 0)))
        f_p = jnp.pad(f, ((0, pad), (0, 0)))
    else:
        x_p, f_p = x, f
    f1 = f_p[:, 0:1]
    f2 = f_p[:, 1:2].reshape(1, Np)
    n_i = Np // tm

    # pass 1: attention + rowsum (row-tiled, parallel over rows)
    att_bf, rowsum = pl.pallas_call(
        functools.partial(_attention_kernel, alpha=alpha),
        out_shape=(jax.ShapeDtypeStruct((Np, Np), jnp.bfloat16),
                   jax.ShapeDtypeStruct((Np, 1), jnp.float32)),
        grid=(n_i,),
        in_specs=[
            pl.BlockSpec((tm, 1), lambda i: (i, 0)),      # f1 row tile
            pl.BlockSpec((1, Np), lambda i: (0, 0)),      # f2 (resident)
            pl.BlockSpec((tm, Np), lambda i: (i, 0)),     # adj row tile (f32, streamed)
        ],
        out_specs=(pl.BlockSpec((tm, Np), lambda i: (i, 0)),
                   pl.BlockSpec((tm, 1), lambda i: (i, 0))),
        compiler_params=pltpu.CompilerParams(
            dimension_semantics=("parallel",),
            vmem_limit_bytes=vmem_limit),
    )(f1, f2, adj)

    # pass 2..: one gridded pass per hop (rows parallel, K reduction arbitrary)
    tk = _choose_tk(Np, tm, F, budget)
    n_k = Np // tk

    hop_call = pl.pallas_call(
        _hop_kernel,
        out_shape=(jax.ShapeDtypeStruct((Np, F), jnp.bfloat16),   # update (bf16 between hops)
                   jax.ShapeDtypeStruct((Np, F), jnp.float32)),   # feat_prime
        grid=(n_i, n_k),
        in_specs=[
            pl.BlockSpec(memory_space=pltpu.MemorySpace.SMEM),    # [coe0, w_prev, w_odd]
            pl.BlockSpec((tm, tk), lambda i, k: (i, k)),          # att bf16
            pl.BlockSpec((tk, F), lambda i, k: (k, 0)),           # update bf16 (K slab)
            pl.BlockSpec((tm, F), lambda i, k: (i, 0)),           # x row tile
            pl.BlockSpec((tm, 1), lambda i, k: (i, 0)),           # rowsum row tile
            pl.BlockSpec((tm, F), lambda i, k: (i, 0)),           # prev feat_prime tile
        ],
        out_specs=(pl.BlockSpec((tm, F), lambda i, k: (i, 0)),
                   pl.BlockSpec((tm, F), lambda i, k: (i, 0))),
        scratch_shapes=[pltpu.VMEM((tm, F), jnp.float32)],        # f32 accumulator
        # feat_prime updated in place (its tile is only read by its own row tile).
        # update is NOT aliased: later row tiles re-read earlier update rows (RAW hazard).
        input_output_aliases={5: 1},
        compiler_params=pltpu.CompilerParams(
            dimension_semantics=("parallel", "arbitrary"),
            vmem_limit_bytes=vmem_limit),
    )

    update = x_p.astype(jnp.bfloat16)
    feat_prime = jnp.zeros((Np, F), jnp.float32)
    for step in range(hop):                                       # hop is static
        if step == 0:
            scal = jnp.stack([coe[0], jnp.float32(0.0), jnp.float32(1.0)])
        else:
            scal = jnp.stack([coe[0], coe[2], jnp.float32(1.0) - coe[2]])
        update, feat_prime = hop_call(scal, att_bf, update, x_p, rowsum, feat_prime)
    return feat_prime[:N, :]


# --------------------------------------------------------------------------- reference
def _reference(x, adj, w_att, a_param, temp, hop, alpha=0.2):
    N, F = x.shape
    h = x @ w_att
    f1 = h @ a_param[:F, :]
    f2 = h @ a_param[F:, :]
    e = f1 + f2.T
    e = jnp.where(e > 0, e, alpha * e)
    mask = adj != 0.0
    e_m = jnp.where(mask, e, -1e30)
    p = jnp.where(mask, jnp.exp(e_m - jnp.max(e_m, axis=1, keepdims=True)), 0.0)
    d = jnp.sum(p, axis=1, keepdims=True)
    att = jnp.where(d > 0, p / jnp.where(d > 0, d, 1.0), 0.0)
    rowsum = jnp.sum(adj * (0.5 * att), axis=1, keepdims=True)
    coe = jax.nn.sigmoid(temp)
    update = x
    feat_prime = None
    for step in range(hop):
        update = att @ update
        feat_even = coe[0] * x + update
        feat_odd = update - feat_even * rowsum
        feat_prime = feat_odd if step == 0 else coe[2] * feat_prime + (1 - coe[2]) * feat_odd
    return feat_prime


def _xavier_uniform(key, shape, gain=1.0):
    fan_in, fan_out = shape[0], shape[1]
    bound = gain * math.sqrt(6.0 / (fan_in + fan_out))
    return jax.random.uniform(key, shape, jnp.float32, -bound, bound)


def _make_inputs(key, nnode, in_features):
    k_x, k_adj_m, k_adj_w, k_watt, k_a = jax.random.split(key, 5)
    x = jax.random.normal(k_x, (nnode, in_features), jnp.float32)
    # sparse adjacency (dense storage), self loops removed, every row nonempty
    bern = jax.random.bernoulli(k_adj_m, 0.08, (nnode, nnode)).astype(jnp.float32)
    ring = jnp.roll(jnp.eye(nnode, dtype=jnp.float32), 1, axis=1)   # edge i -> (i+1) % N
    mask = jnp.clip(bern + ring, 0.0, 1.0)
    mask = mask * (1.0 - jnp.eye(nnode, dtype=jnp.float32))         # remove self loops
    weights = jax.random.uniform(k_adj_w, (nnode, nnode), jnp.float32, 0.5, 1.5)
    adj_dense = mask * weights
    w_att = _xavier_uniform(k_watt, (in_features, in_features))
    a_param = _xavier_uniform(k_a, (2 * in_features, 1), gain=1.414)
    temp = jnp.zeros((4,), jnp.float32)                             # temp.data.fill_(0.0)
    return x, adj_dense, w_att, a_param, temp


if __name__ == "__main__":
    # small shapes consistent with the module: nnode nodes, in_features feature dim
    nnode, in_features, hop = 128, 32, 3

    x, adj, w_att, a_param, temp = _make_inputs(jax.random.PRNGKey(0), nnode, in_features)
    out = noflayer_forward(x, adj, w_att, a_param, temp, hop=hop)
    out = jax.block_until_ready(out)
    ref = _reference(x, adj, w_att, a_param, temp, hop)
    assert out.shape == (nnode, in_features)
    # tolerance: att / hop matmuls run bf16->f32, softmax denom uses approx reciprocal
    assert jnp.allclose(out, ref, atol=5e-2, rtol=5e-2), "fused path mismatch vs reference"

    # also exercise the tiled (large-graph) path, incl. N padding, at a small size
    n2 = 384
    x2, adj2, w2, a2, t2 = _make_inputs(jax.random.PRNGKey(1), n2, in_features)
    out2 = noflayer_forward(x2, adj2, w2, a2, t2, hop=2, force_tiled=True)
    out2 = jax.block_until_ready(out2)
    ref2 = _reference(x2, adj2, w2, a2, t2, 2)
    assert out2.shape == (n2, in_features)
    assert jnp.allclose(out2, ref2, atol=5e-2, rtol=5e-2), "tiled path mismatch vs reference"

    print("KERNEL_OK")
</pallas_src>

<mosaic_0001>
module attributes {stable_mosaic.version = 11 : i64} {
  func.func @_fused_kernel(%arg0: memref<2xf32, #tpu.memory_space<smem>>, %arg1: memref<128x128xf32, #tpu.memory_space<vmem>>, %arg2: memref<128x1xf32, #tpu.memory_space<vmem>>, %arg3: memref<1x128xf32, #tpu.memory_space<vmem>>, %arg4: memref<128x32xf32, #tpu.memory_space<vmem>>, %arg5: memref<128x32xf32, #tpu.memory_space<vmem>>) attributes {dimension_semantics = [], scalar_prefetch = 0 : i64, scratch_operands = 0 : i64, tpu.core_type = #tpu.core_type<tc>} {
    %c0 = arith.constant 0 : index
    %c0_0 = arith.constant 0 : index
    %0 = vector.load %arg1[%c0, %c0_0] : memref<128x128xf32, #tpu.memory_space<vmem>>, vector<128x128xf32>
    %cst = arith.constant 0.000000e+00 : f32
    %1 = vector.broadcast %cst : f32 to vector<128x128xf32>
    %2 = arith.cmpf one, %0, %1 : vector<128x128xf32>
    %c0_1 = arith.constant 0 : index
    %c0_2 = arith.constant 0 : index
    %3 = vector.load %arg2[%c0_1, %c0_2] : memref<128x1xf32, #tpu.memory_space<vmem>>, vector<128x1xf32>
    %c0_3 = arith.constant 0 : index
    %c0_4 = arith.constant 0 : index
    %4 = vector.load %arg3[%c0_3, %c0_4] : memref<1x128xf32, #tpu.memory_space<vmem>>, vector<1x128xf32>
    %5 = vector.broadcast %3 : vector<128x1xf32> to vector<128x128xf32>
    %6 = vector.broadcast %4 : vector<1x128xf32> to vector<128x128xf32>
    %7 = arith.addf %5, %6 : vector<128x128xf32>
    %cst_5 = arith.constant 2.000000e-01 : f32
    %8 = vector.broadcast %cst_5 : f32 to vector<128x128xf32>
    %9 = arith.mulf %8, %7 : vector<128x128xf32>
    %10 = arith.maximumf %7, %9 : vector<128x128xf32>
    %cst_6 = arith.constant -1.000000e+30 : f32
    %11 = vector.broadcast %cst_6 : f32 to vector<128x128xf32>
    %12 = arith.select %2, %10, %11 : vector<128x128xi1>, vector<128x128xf32>
    %cst_7 = arith.constant dense<0xFF800000> : vector<128xf32>
    %13 = vector.multi_reduction <maximumf>, %12, %cst_7 [1] : vector<128x128xf32> to vector<128xf32>
    %14 = vector.shape_cast %13 : vector<128xf32> to vector<128x1xf32>
    %cst_8 = arith.constant 0.000000e+00 : f32
    %15 = vector.broadcast %cst_8 : f32 to vector<128x1xf32>
    %16 = arith.maximumf %14, %15 : vector<128x1xf32>
    %17 = vector.broadcast %16 : vector<128x1xf32> to vector<128x128xf32>
    %18 = arith.subf %12, %17 : vector<128x128xf32>
    %19 = math.exp %18 : vector<128x128xf32>
    %cst_9 = arith.constant dense<0.000000e+00> : vector<128xf32>
    %20 = vector.multi_reduction <add>, %19, %cst_9 [1] : vector<128x128xf32> to vector<128xf32>
    %21 = vector.shape_cast %20 : vector<128xf32> to vector<128x1xf32>
    %cst_10 = arith.constant 0.000000e+00 : f32
    %22 = vector.broadcast %cst_10 : f32 to vector<128x1xf32>
    %23 = arith.cmpf ogt, %21, %22 : vector<128x1xf32>
    %cst_11 = arith.constant 1.000000e+00 : f32
    %24 = vector.broadcast %cst_11 : f32 to vector<128x1xf32>
    %25 = arith.select %23, %21, %24 : vector<128x1xi1>, vector<128x1xf32>
    %26 = tpu.reciprocal %25 {approx = true} : vector<128x1xf32> -> vector<128x1xf32>
    %27 = vector.broadcast %26 : vector<128x1xf32> to vector<128x128xf32>
    %28 = arith.mulf %19, %27 : vector<128x128xf32>
    %29 = arith.mulf %0, %28 : vector<128x128xf32>
    %cst_12 = arith.constant dense<0.000000e+00> : vector<128xf32>
    %30 = vector.multi_reduction <add>, %29, %cst_12 [1] : vector<128x128xf32> to vector<128xf32>
    %31 = vector.shape_cast %30 : vector<128xf32> to vector<128x1xf32>
    %cst_13 = arith.constant 5.000000e-01 : f32
    %32 = vector.broadcast %cst_13 : f32 to vector<128x1xf32>
    %33 = arith.mulf %32, %31 : vector<128x1xf32>
    %34 = arith.truncf %28 : vector<128x128xf32> to vector<128x128xbf16>
    %c0_14 = arith.constant 0 : index
    %35 = memref.load %arg0[%c0_14] : memref<2xf32, #tpu.memory_space<smem>>
    %c1 = arith.constant 1 : index
    %36 = memref.load %arg0[%c1] : memref<2xf32, #tpu.memory_space<smem>>
    %c0_15 = arith.constant 0 : index
    %c0_16 = arith.constant 0 : index
    %37 = vector.load %arg4[%c0_15, %c0_16] : memref<128x32xf32, #tpu.memory_space<vmem>>, vector<128x32xf32>
    %38 = arith.truncf %37 : vector<128x32xf32> to vector<128x32xbf16>
    %cst_17 = arith.constant dense<0.000000e+00> : vector<128x32xf32>
    %39 = tpu.matmul %34, %38, %cst_17 {dimension_numbers = #tpu.dot_dimension_numbers<[1], [0], [0], [1], [0, 0, 1, 1], [], []>} : vector<128x128xbf16>, vector<128x32xbf16>, vector<128x32xf32> -> vector<128x32xf32>
    %40 = vector.broadcast %35 : f32 to vector<128x32xf32>
    %41 = arith.mulf %40, %37 : vector<128x32xf32>
    %42 = arith.addf %41, %39 : vector<128x32xf32>
    %43 = vector.broadcast %33 : vector<128x1xf32> to vector<128x32xf32>
    %44 = arith.mulf %42, %43 : vector<128x32xf32>
    %45 = arith.subf %39, %44 : vector<128x32xf32>
    %46 = arith.truncf %39 : vector<128x32xf32> to vector<128x32xbf16>
    %cst_18 = arith.constant dense<0.000000e+00> : vector<128x32xf32>
    %47 = tpu.matmul %34, %46, %cst_18 {dimension_numbers = #tpu.dot_dimension_numbers<[1], [0], [0], [1], [0, 0, 1, 1], [], []>} : vector<128x128xbf16>, vector<128x32xbf16>, vector<128x32xf32> -> vector<128x32xf32>
    %48 = vector.broadcast %35 : f32 to vector<128x32xf32>
    %49 = arith.mulf %48, %37 : vector<128x32xf32>
    %50 = arith.addf %49, %47 : vector<128x32xf32>
    %51 = vector.broadcast %33 : vector<128x1xf32> to vector<128x32xf32>
    %52 = arith.mulf %50, %51 : vector<128x32xf32>
    %53 = arith.subf %47, %52 : vector<128x32xf32>
    %54 = vector.broadcast %36 : f32 to vector<128x32xf32>
    %55 = arith.mulf %54, %45 : vector<128x32xf32>
    %cst_19 = arith.constant 1.000000e+00 : f32
    %56 = arith.subf %cst_19, %36 : f32
    %57 = vector.broadcast %56 : f32 to vector<128x32xf32>
    %58 = arith.mulf %57, %53 : vector<128x32xf32>
    %59 = arith.addf %55, %58 : vector<128x32xf32>
    %60 = arith.truncf %47 : vector<128x32xf32> to vector<128x32xbf16>
    %cst_20 = arith.constant dense<0.000000e+00> : vector<128x32xf32>
    %61 = tpu.matmul %34, %60, %cst_20 {dimension_numbers = #tpu.dot_dimension_numbers<[1], [0], [0], [1], [0, 0, 1, 1], [], []>} : vector<128x128xbf16>, vector<128x32xbf16>, vector<128x32xf32> -> vector<128x32xf32>
    %62 = vector.broadcast %35 : f32 to vector<128x32xf32>
    %63 = arith.mulf %62, %37 : vector<128x32xf32>
    %64 = arith.addf %63, %61 : vector<128x32xf32>
    %65 = vector.broadcast %33 : vector<128x1xf32> to vector<128x32xf32>
    %66 = arith.mulf %64, %65 : vector<128x32xf32>
    %67 = arith.subf %61, %66 : vector<128x32xf32>
    %68 = vector.broadcast %36 : f32 to vector<128x32xf32>
    %69 = arith.mulf %68, %59 : vector<128x32xf32>
    %cst_21 = arith.constant 1.000000e+00 : f32
    %70 = arith.subf %cst_21, %36 : f32
    %71 = vector.broadcast %70 : f32 to vector<128x32xf32>
    %72 = arith.mulf %71, %67 : vector<128x32xf32>
    %73 = arith.addf %69, %72 : vector<128x32xf32>
    %c0_22 = arith.constant 0 : index
    %c0_23 = arith.constant 0 : index
    %74 = vector.load %arg5[%c0_22, %c0_23] : memref<128x32xf32, #tpu.memory_space<vmem>>, vector<128x32xf32>
    tpu.vector_store %arg5[%c0_22, %c0_23], %73 {strides = array<i32>} : memref<128x32xf32, #tpu.memory_space<vmem>>, vector<128x32xf32>,
    return
  }
}

</mosaic_0001>

<bundles_post_ra>
// kernel: noflayer_forward.1
= control target key start
LH: loop header
LB: loop body
LE: loop exit
PB: predicated region body
PF: predicated region fallthrough
CT: control target
= control target key end

     0   :  { %10 = vsyncpa [#allocation3], 0  ;;  %s2389_s0 = inlined_call_operand.vmem [shape: f32[2], index: 0, kind: input, shape index: {}]   ;;  %s2390_s1 = inlined_call_operand.vmem [shape: f32[128,128], index: 1, kind: input, shape index: {}]   ;;  %s2391_s2 = inlined_call_operand.vmem [shape: f32[128,1], index: 2, kind: input, shape index: {}]   ;;  %s2392_s3 = inlined_call_operand.vmem [shape: f32[1,128], index: 3, kind: input, shape index: {}]   ;;  %s2393_s4 = inlined_call_operand.vmem [shape: f32[128,32], index: 4, kind: input, shape index: {}]   ;;  %s2394_s5 = inlined_call_operand.vmem [shape: f32[128,32], index: 5, kind: output, shape index: {}]  }
   0x1   :  { %s17_s20 = sshll.u32 %s2389_s0, 4  ;;  %s18_s20 = int_to_ptr.vmem [resolvable:$true] %s17_s20 }
   0x2   :  { %s1342_s21 = scalar_lea.vmem %s18_s20, 16  ;;  %p1347_p1 = scmp.lt.s32.totalorder %s18_s20, %s18_s20 }
   0x3   :  { %p1343_p0 = scmp.ne.s32.totalorder %s18_s20, %s1342_s21  ;;  %p1348_p2 = scmp.lt.s32.totalorder %s1342_s21, %s1342_s21 }
   0x5   :  { %p1349_p3 = por %p1348_p2, %p1347_p1 }
   0x7   :  { %p1350_p4 = pnand %p1349_p3, %p1343_p0 }
   0x9   :  { %1353 = shalt.err (!%p1350_p4)
}
   0xa   :  { %s1356_s22 = smov [#allocation2]  }
   0xb   :  { %20 = dma.vmem_to_smem %s18_s20, 16, %s1356_s22, [#allocation3]  }
   0xc   :  { %1354 = dma.done.wait [#allocation3], 16  }
   0xd   :  { %1355 = vsyncadd [#allocation3], 4294967280 }
   0xe   :  { %32 = sfence }
   0xf   :  { %v68_v0 = vld [vmem:[%s2391_s2 + $0x10] sm:$0xff]  ;;  %v66_v1 = vld [vmem:[%s2391_s2] sm:$0xff]  ;;  %v1357_v2 = vmov 0   ;;  %v69_v3 = vld [vmem:[%s2391_s2 + $0x18] sm:$0xff]  ;;  %s1113_s9 = sld [smem:[#allocation2 + $0x1]] }
  0x10   :  { %1277 = vset.pattern.permute.xlu1 %v1357_v2  ;;  %1276 = vset.pattern.permute.xlu0 %v1357_v2  ;;  %v67_v4 = vld [vmem:[%s2391_s2 + $0x8] sm:$0xff]  ;;  %v70_v6 = vld [vmem:[%s2391_s2 + $0x20] sm:$0xff]  ;;  %v73_v7 = vld [vmem:[%s2391_s2 + $0x38] sm:$0xff] }
  0x11   :  { %95 = vperm.xlu1 %1277, %v68_v0   ;;  %85 = vperm.xlu0 %1276, %v66_v1   ;;  %v71_v5 = vld [vmem:[%s2391_s2 + $0x28] sm:$0xff]  ;;  %v72_v8 = vld [vmem:[%s2391_s2 + $0x30] sm:$0xff]  ;;  %v74_v10 = vld [vmem:[%s2391_s2 + $0x40] sm:$0xff] }
  0x12   :  { %v75_v9 = vld [vmem:[%s2391_s2 + $0x48] sm:$0xff]  ;;  %v77_v11 = vld [vmem:[%s2391_s2 + $0x58] sm:$0xff]  ;;  %v76_v12 = vld [vmem:[%s2391_s2 + $0x50] sm:$0xff] }
  0x13   :  { %v79_v13 = vld [vmem:[%s2391_s2 + $0x68] sm:$0xff]  ;;  %v78_v14 = vld [vmem:[%s2391_s2 + $0x60] sm:$0xff]  ;;  %v81_v15 = vld [vmem:[%s2391_s2 + $0x78] sm:$0xff] }
  0x14   :  { %v80_v16 = vld [vmem:[%s2391_s2 + $0x70] sm:$0xff]  ;;  %v1442_v17 = vld [vmem:[%s2392_s3] ss:$0 sm:$0xff]  ;;  %v1462_v31 = vld [vmem:[%s2390_s1 + $0x8] sm:$0xff] }
  0x15   :  { %100 = vperm.xlu1 %1277, %v69_v3   ;;  %90 = vperm.xlu0 %1276, %v67_v4   ;;  %v1449_v22 = vld [vmem:[%s2390_s1] sm:$0xff]  ;;  %v1454_v25 = vld [vmem:[%s2390_s1 + $0x10] sm:$0xff]  ;;  %v1468_v33 = vld [vmem:[%s2390_s1 + $0x18] sm:$0xff]  ;;  %vm51_vm2 = vcmp.ne.f32.partialorder %v1462_v31, 0.0  ;;  %s855_s10 = ssub.f32 1.0, %s1113_s9 }
  0x16   :  { %vm50_vm0 = vcmp.ne.f32.partialorder %v1449_v22, 0.0  ;;  %vm52_vm1 = vcmp.ne.f32.partialorder %v1454_v25, 0.0  ;;  %v1479_v42 = vld [vmem:[%s2390_s1 + $0x20] sm:$0xff]  ;;  %vm53_vm3 = vcmp.ne.f32.partialorder %v1468_v33, 0.0  ;;  %v1487_v45 = vld [vmem:[%s2390_s1 + $0x28] sm:$0xff]  ;;  %v1499_v54 = vld [vmem:[%s2390_s1 + $0x30] sm:$0xff] }
  0x17   :  { %vm54_vm4 = vcmp.ne.f32.partialorder %v1479_v42, 0.0  ;;  %vm55_vm5 = vcmp.ne.f32.partialorder %v1487_v45, 0.0  ;;  %v1507_v57 = vld [vmem:[%s2390_s1 + $0x38] sm:$0xff]  ;;  %vm56_vm6 = vcmp.ne.f32.partialorder %v1499_v54, 0.0  ;;  %v1519_v2 = vld [vmem:[%s2390_s1 + $0x40] sm:$0xff] }
  0x18   :  { %vm57_vm7 = vcmp.ne.f32.partialorder %v1507_v57, 0.0  ;;  %vm58_vm8 = vcmp.ne.f32.partialorder %v1519_v2, 0.0 }
  0x19   :  { %110 = vperm.xlu1 %1277, %v71_v5   ;;  %105 = vperm.xlu0 %1276, %v70_v6   ;;  %v1527_v5 = vld [vmem:[%s2390_s1 + $0x48] sm:$0xff] }
  0x1a   :  { %vm59_vm9 = vcmp.ne.f32.partialorder %v1527_v5, 0.0 }
  0x1d   :  { %120 = vperm.xlu1 %1277, %v73_v7   ;;  %115 = vperm.xlu0 %1276, %v72_v8  }
  0x21   :  { %130 = vperm.xlu1 %1277, %v75_v9   ;;  %125 = vperm.xlu0 %1276, %v74_v10  }
  0x25   :  { %140 = vperm.xlu1 %1277, %v77_v11   ;;  %135 = vperm.xlu0 %1276, %v76_v12  }
  0x29   :  { %150 = vperm.xlu1 %1277, %v79_v13   ;;  %145 = vperm.xlu0 %1276, %v78_v14   ;;  %v1539_v14 = vld [vmem:[%s2390_s1 + $0x50] sm:$0xff] }
  0x2a   :  { %vm60_vm10 = vcmp.ne.f32.partialorder %v1539_v14, 0.0 }
  0x2d   :  { %160 = vperm.xlu1 %1277, %v81_v15   ;;  %155 = vperm.xlu0 %1276, %v80_v16  }
  0x90   :  { %v96_v18 = vpop.permute.xlu1 %95  ;;  %v86_v19 = vpop.permute.xlu0 %85 }
  0x91   :  { %v171_v20 = vadd.f32 %v1442_v17, %v96_v18  ;;  %v169_v21 = vadd.f32 %v1442_v17, %v86_v19  ;;  %v1547_v18 = vld [vmem:[%s2390_s1 + $0x58] sm:$0xff] }
  0x92   :  { %vm61_vm11 = vcmp.ne.f32.partialorder %v1547_v18, 0.0 }
  0x93   :  { %v187_v23 = vmul.f32 0.2, %v171_v20  ;;  %v185_v24 = vmul.f32 0.2, %v169_v21 }
  0x94   :  { %v101_v26 = vpop.permute.xlu1 %100  ;;  %v91_v27 = vpop.permute.xlu0 %90 }
  0x95   :  { %v172_v28 = vadd.f32 %v1442_v17, %v101_v26  ;;  %v170_v29 = vadd.f32 %v1442_v17, %v91_v27  ;;  %v201_v30 = vmax.f32 %v169_v21, %v185_v24  ;;  %v203_v32 = vmax.f32 %v171_v20, %v187_v23 }
  0x97   :  { %v188_v34 = vmul.f32 0.2, %v172_v28  ;;  %v186_v35 = vmul.f32 0.2, %v170_v29  ;;  %v1470_v36 = vsel %vm50_vm0, %v201_v30, -1e+30 }
  0x98   :  { %v111_v37 = vpop.permute.xlu1 %110  ;;  %v106_v38 = vpop.permute.xlu0 %105  ;;  %233 = vmax.xlane.f32.xlu0 %v1470_v36  ;;  %v1481_v43 = vsel %vm52_vm1, %v203_v32, -1e+30 }
  0x99   :  { %v174_v39 = vadd.f32 %v1442_v17, %v111_v37  ;;  %v173_v40 = vadd.f32 %v1442_v17, %v106_v38  ;;  %v202_v41 = vmax.f32 %v170_v29, %v186_v35  ;;  %v204_v44 = vmax.f32 %v172_v28, %v188_v34  ;;  %v1559_v29 = vld [vmem:[%s2390_s1 + $0x60] sm:$0xff] }
  0x9a   :  { %vm62_vm12 = vcmp.ne.f32.partialorder %v1559_v29, 0.0 }
  0x9b   :  { %v190_v46 = vmul.f32 0.2, %v174_v39  ;;  %v189_v47 = vmul.f32 0.2, %v173_v40  ;;  %v1489_v48 = vsel %vm51_vm2, %v202_v41, -1e+30 }
  0x9c   :  { %v121_v49 = vpop.permute.xlu1 %120  ;;  %v116_v50 = vpop.permute.xlu0 %115  ;;  %235 = vmax.xlane.f32.xlu1 %v1489_v48  ;;  %237 = vmax.xlane.f32.xlu0 %v1481_v43  ;;  %v1501_v55 = vsel %vm53_vm3, %v204_v44, -1e+30 }
  0x9d   :  { %v176_v51 = vadd.f32 %v1442_v17, %v121_v49  ;;  %v175_v52 = vadd.f32 %v1442_v17, %v116_v50  ;;  %v205_v53 = vmax.f32 %v173_v40, %v189_v47  ;;  %v206_v56 = vmax.f32 %v174_v39, %v190_v46  ;;  %v1574_v46 = vld [vmem:[%s2390_s1 + $0x70] sm:$0xff]  ;;  %v1579_v47 = vld [vmem:[%s2390_s1 + $0x68] sm:$0xff] }
  0x9e   :  { %vm64_vm13 = vcmp.ne.f32.partialorder %v1574_v46, 0.0  ;;  %vm63_vm14 = vcmp.ne.f32.partialorder %v1579_v47, 0.0 }
  0x9f   :  { %v192_v58 = vmul.f32 0.2, %v176_v51  ;;  %v191_v59 = vmul.f32 0.2, %v175_v52  ;;  %v1509_v60 = vsel %vm54_vm4, %v205_v53, -1e+30 }
  0xa0   :  { %v131_v61 = vpop.permute.xlu1 %130  ;;  %v126_v62 = vpop.permute.xlu0 %125  ;;  %241 = vmax.xlane.f32.xlu1 %v1509_v60  ;;  %239 = vmax.xlane.f32.xlu0 %v1501_v55  ;;  %v1521_v3 = vsel %vm55_vm5, %v206_v56, -1e+30  ;;  %v1592_v56 = vld [vmem:[%s2390_s1 + $0x78] sm:$0xff] }
  0xa1   :  { %v178_v63 = vadd.f32 %v1442_v17, %v131_v61  ;;  %v177_v0 = vadd.f32 %v1442_v17, %v126_v62  ;;  %v207_v1 = vmax.f32 %v175_v52, %v191_v59  ;;  %v208_v4 = vmax.f32 %v176_v51, %v192_v58 }
  0xa2   :  { %vm65_vm15 = vcmp.ne.f32.partialorder %v1592_v56, 0.0 }
  0xa3   :  { %v194_v6 = vmul.f32 0.2, %v178_v63  ;;  %v193_v7 = vmul.f32 0.2, %v177_v0  ;;  %v1529_v8 = vsel %vm56_vm6, %v207_v1, -1e+30 }
  0xa4   :  { %v141_v9 = vpop.permute.xlu1 %140  ;;  %v136_v10 = vpop.permute.xlu0 %135  ;;  %245 = vmax.xlane.f32.xlu1 %v1529_v8  ;;  %243 = vmax.xlane.f32.xlu0 %v1521_v3  ;;  %v1541_v15 = vsel %vm57_vm7, %v208_v4, -1e+30  ;;  %v1617_v1 = vld [vmem:[%s2393_s4 + $0x10] sm:$0xff] }
  0xa5   :  { %v180_v11 = vadd.f32 %v1442_v17, %v141_v9  ;;  %v179_v12 = vadd.f32 %v1442_v17, %v136_v10  ;;  %v209_v13 = vmax.f32 %v177_v0, %v193_v7  ;;  %v210_v16 = vmax.f32 %v178_v63, %v194_v6  ;;  %v1607_v63 = vld [vmem:[%s2393_s4] sm:$0xff]  ;;  %v1612_v0 = vld [vmem:[%s2393_s4 + $0x8] sm:$0xff]  ;;  %v1624_v6 = vld [vmem:[%s2393_s4 + $0x18] sm:$0xff] }
  0xa6   :  { %v515_v4 = vpack.c.bf16 %v1612_v0, %v1607_v63  ;;  %v516_v7 = vpack.c.bf16 %v1624_v6, %v1617_v1 }
  0xa7   :  { %v196_v19 = vmul.f32 0.2, %v180_v11  ;;  %v195_v20 = vmul.f32 0.2, %v179_v12  ;;  %v1549_v21 = vsel %vm58_vm8, %v209_v13, -1e+30 }
  0xa8   :  { %v151_v23 = vpop.permute.xlu1 %150  ;;  %v146_v24 = vpop.permute.xlu0 %145  ;;  %249 = vmax.xlane.f32.xlu1 %v1549_v21  ;;  %247 = vmax.xlane.f32.xlu0 %v1541_v15  ;;  %v1561_v30 = vsel %vm59_vm9, %v210_v16, -1e+30 }
  0xa9   :  { %v182_v26 = vadd.f32 %v1442_v17, %v151_v23  ;;  %v181_v27 = vadd.f32 %v1442_v17, %v146_v24  ;;  %v211_v28 = vmax.f32 %v179_v12, %v195_v20  ;;  %v212_v32 = vmax.f32 %v180_v11, %v196_v19  ;;  %1162 = vmatprep.subr.bf16.mxu0 %v515_v4 }
  0xaa   :  { %1163 = vmatpush3.bf16.msra.mxu0 %v515_v4 }
  0xab   :  { %v198_v34 = vmul.f32 0.2, %v182_v26  ;;  %v197_v35 = vmul.f32 0.2, %v181_v27  ;;  %v1564_v37 = vsel %vm60_vm10, %v211_v28, -1e+30  ;;  %1164 = vmatprep.subr.bf16.mxu0 %v516_v7 }
  0xac   :  { %v161_v38 = vpop.permute.xlu1 %160  ;;  %v156_v39 = vpop.permute.xlu0 %155  ;;  %253 = vmax.xlane.f32.xlu1 %v1564_v37  ;;  %251 = vmax.xlane.f32.xlu0 %v1561_v30  ;;  %v1581_v49 = vsel %vm61_vm11, %v212_v32, -1e+30 }
  0xad   :  { %v184_v40 = vadd.f32 %v1442_v17, %v161_v38  ;;  %v183_v41 = vadd.f32 %v1442_v17, %v156_v39  ;;  %v213_v44 = vmax.f32 %v181_v27, %v197_v35  ;;  %v214_v53 = vmax.f32 %v182_v26, %v198_v34 }
  0xae   :  { %1165 = vmatpush3.bf16.msra.mxu0 %v516_v7 }
  0xaf   :  { %v200_v50 = vmul.f32 0.2, %v184_v40  ;;  %v199_v51 = vmul.f32 0.2, %v183_v41  ;;  %v1583_v52 = vsel %vm62_vm12, %v213_v44, -1e+30 }
  0xb0   :  { %257 = vmax.xlane.f32.xlu1 %v1583_v52  ;;  %255 = vmax.xlane.f32.xlu0 %v1581_v49  ;;  %v1596_v59 = vsel %vm63_vm14, %v214_v53, -1e+30 }
  0xb1   :  { %v215_v17 = vmax.f32 %v183_v41, %v199_v51  ;;  %v216_v61 = vmax.f32 %v184_v40, %v200_v50 }
  0xb3   :  { %v1594_v58 = vsel %vm64_vm13, %v215_v17, -1e+30  ;;  %v1601_v62 = vsel %vm65_vm15, %v216_v61, -1e+30 }
  0xb4   :  { %261 = vmax.xlane.f32.xlu1 %v1594_v58  ;;  %259 = vmax.xlane.f32.xlu0 %v1596_v59 }
  0xb8   :  { %263 = vmax.xlane.f32.xlu0 %v1601_v62 }
 0x125   :  { %v234_v9 = vpop.xlane.xlu0 %233 }
 0x126   :  { %v265_v10 = vmax.f32 %v234_v9, 0.0 }
 0x128   :  { %v281_v11 = vsub.f32 %v1470_v36, %v265_v10 }
 0x129   :  { %v236_v12 = vpop.xlane.xlu1 %235  ;;  %v238_v13 = vpop.xlane.xlu0 %237 }
 0x12a   :  { %v297_v16 = vmul.f32 1.442695, %v281_v11  ;;  %v266_v19 = vmax.f32 %v236_v12, 0.0  ;;  %v267_v20 = vmax.f32 %v238_v13, 0.0 }
 0x12c   :  { %1278 = vpow2.f32 %v297_v16  ;;  %v282_v23 = vsub.f32 %v1489_v48, %v266_v19  ;;  %v283_v24 = vsub.f32 %v1481_v43, %v267_v20 }
 0x12d   :  { %v242_v26 = vpop.xlane.xlu1 %241  ;;  %v240_v27 = vpop.xlane.xlu0 %239 }
 0x12e   :  { %v299_v28 = vmul.f32 1.442695, %v282_v23  ;;  %v301_v32 = vmul.f32 1.442695, %v283_v24  ;;  %v269_v34 = vmax.f32 %v242_v26, 0.0  ;;  %v268_v35 = vmax.f32 %v240_v27, 0.0 }
 0x130   :  { %1280 = vpow2.f32 %v299_v28  ;;  %v285_v38 = vsub.f32 %v1509_v60, %v269_v34  ;;  %v284_v36 = vsub.f32 %v1501_v55, %v268_v35 }
 0x131   :  { %1282 = vpow2.f32 %v301_v32  ;;  %v246_v39 = vpop.xlane.xlu1 %245  ;;  %v244_v40 = vpop.xlane.xlu0 %243 }
 0x132   :  { %v305_v41 = vmul.f32 1.442695, %v285_v38  ;;  %v303_v44 = vmul.f32 1.442695, %v284_v36  ;;  %v271_v50 = vmax.f32 %v246_v39, 0.0  ;;  %v270_v48 = vmax.f32 %v244_v40, 0.0 }
 0x134   :  { %1284 = vpow2.f32 %v305_v41  ;;  %v287_v43 = vsub.f32 %v1529_v8, %v271_v50  ;;  %v286_v51 = vsub.f32 %v1521_v3, %v270_v48 }
 0x135   :  { %1286 = vpow2.f32 %v303_v44  ;;  %v250_v53 = vpop.xlane.xlu1 %249  ;;  %v248_v17 = vpop.xlane.xlu0 %247 }
 0x136   :  { %v1635_v61 = vpop.eup %1278  ;;  %v309_v60 = vmul.f32 1.442695, %v287_v43  ;;  %v307_v4 = vmul.f32 1.442695, %v286_v51  ;;  %v273_v55 = vmax.f32 %v250_v53, 0.0  ;;  %v272_v7 = vmax.f32 %v248_v17, 0.0 }
 0x137   :  { %329 = vadd.xlane.f32.xlu1 %v1635_v61  ;;  %v1667_v43 = vld [vmem:[%s2393_s4 + $0x20] sm:$0xff]  ;;  %v1672_v51 = vld [vmem:[%s2393_s4 + $0x28] sm:$0xff] }
 0x138   :  { %1288 = vpow2.f32 %v309_v60  ;;  %v289_v9 = vsub.f32 %v1549_v21, %v273_v55  ;;  %v288_v10 = vsub.f32 %v1541_v15, %v272_v7 }
 0x139   :  { %1290 = vpow2.f32 %v307_v4  ;;  %v254_v8 = vpop.xlane.xlu1 %253  ;;  %v252_v11 = vpop.xlane.xlu0 %251 }
 0x13a   :  { %v1640_v3 = vpop.eup %1280  ;;  %v313_v12 = vmul.f32 1.442695, %v289_v9  ;;  %v311_v13 = vmul.f32 1.442695, %v288_v10  ;;  %v275_v16 = vmax.f32 %v254_v8, 0.0  ;;  %v274_v19 = vmax.f32 %v252_v11, 0.0 }
 0x13b   :  { %v1642_v20 = vpop.eup %1282  ;;  %331 = vadd.xlane.f32.xlu0 %v1640_v3  ;;  %v1686_v9 = vld [vmem:[%s2393_s4 + $0x30] sm:$0xff]  ;;  %v1691_v10 = vld [vmem:[%s2393_s4 + $0x38] sm:$0xff] }
 0x13c   :  { %1292 = vpow2.f32 %v313_v12  ;;  %v291_v23 = vsub.f32 %v1564_v37, %v275_v16  ;;  %v290_v21 = vsub.f32 %v1561_v30, %v274_v19  ;;  %333 = vadd.xlane.f32.xlu1 %v1642_v20  ;;  %v518_v8 = vpack.c.bf16 %v1691_v10, %v1686_v9  ;;  %v1709_v16 = vld [vmem:[%s2393_s4 + $0x48] sm:$0xff] }
 0x13d   :  { %1294 = vpow2.f32 %v311_v13  ;;  %v258_v15 = vpop.xlane.xlu1 %257  ;;  %v256_v24 = vpop.xlane.xlu0 %255  ;;  %v1704_v13 = vld [vmem:[%s2393_s4 + $0x40] sm:$0xff] }
 0x13e   :  { %v1648_v26 = vpop.eup %1284  ;;  %v317_v27 = vmul.f32 1.442695, %v291_v23  ;;  %v315_v28 = vmul.f32 1.442695, %v290_v21  ;;  %v277_v32 = vmax.f32 %v258_v15, 0.0  ;;  %v276_v34 = vmax.f32 %v256_v24, 0.0 }
 0x13f   :  { %v1650_v35 = vpop.eup %1286  ;;  %v519_v23 = vpack.c.bf16 %v1709_v16, %v1704_v13  ;;  %v1722_v15 = vld [vmem:[%s2393_s4 + $0x50] sm:$0xff]  ;;  %v1727_v24 = vld [vmem:[%s2393_s4 + $0x58] sm:$0xff] }
 0x140   :  { %1296 = vpow2.f32 %v317_v27  ;;  %v293_v38 = vsub.f32 %v1583_v52, %v277_v32  ;;  %v292_v37 = vsub.f32 %v1581_v49, %v276_v34  ;;  %337 = vadd.xlane.f32.xlu1 %v1648_v26  ;;  %335 = vadd.xlane.f32.xlu0 %v1650_v35  ;;  %v1740_v34 = vld [vmem:[%s2393_s4 + $0x60] sm:$0xff] }
 0x141   :  { %1298 = vpow2.f32 %v315_v28  ;;  %v262_v30 = vpop.xlane.xlu1 %261  ;;  %v260_v36 = vpop.xlane.xlu0 %259  ;;  %v520_v28 = vpack.c.bf16 %v1727_v24, %v1722_v15 }
 0x142   :  { %v1656_v39 = vpop.eup %1288  ;;  %v321_v40 = vmul.f32 1.442695, %v293_v38  ;;  %v319_v41 = vmul.f32 1.442695, %v292_v37  ;;  %v279_v44 = vmax.f32 %v262_v30, 0.0  ;;  %v278_v50 = vmax.f32 %v260_v36, 0.0 }
 0x143   :  { %v1658_v48 = vpop.eup %1290  ;;  %v1745_v38 = vld [vmem:[%s2393_s4 + $0x68] sm:$0xff]  ;;  %v1755_v36 = vld [vmem:[%s2393_s4 + $0x70] sm:$0xff] }
 0x144   :  { %1300 = vpow2.f32 %v321_v40  ;;  %v295_v52 = vsub.f32 %v1594_v58, %v279_v44  ;;  %v294_v49 = vsub.f32 %v1596_v59, %v278_v50  ;;  %341 = vadd.xlane.f32.xlu1 %v1656_v39  ;;  %339 = vadd.xlane.f32.xlu0 %v1658_v48  ;;  %v517_v58 = vpack.c.bf16 %v1672_v51, %v1667_v43  ;;  %v1760_v40 = vld [vmem:[%s2393_s4 + $0x78] sm:$0xff]  ;;  %s497_s4 = sld [smem:[#allocation2]] }
 0x145   :  { %1302 = vpow2.f32 %v319_v41  ;;  %v264_v53 = vpop.xlane.xlu0 %263  ;;  %v521_v30 = vpack.c.bf16 %v1745_v38, %v1740_v34  ;;  %v522_v41 = vpack.c.bf16 %v1760_v40, %v1755_v36 }
 0x146   :  { %v1676_v59 = vpop.eup %1292  ;;  %v325_v17 = vmul.f32 1.442695, %v295_v52  ;;  %v323_v60 = vmul.f32 1.442695, %v294_v49  ;;  %v280_v4 = vmax.f32 %v264_v53, 0.0  ;;  %1166 = vmatprep.subr.bf16.mxu0 %v517_v58 }
 0x147   :  { %v1678_v55 = vpop.eup %1294  ;;  %1167 = vmatpush3.bf16.msra.mxu0 %v517_v58 }
 0x148   :  { %1304 = vpow2.f32 %v325_v17  ;;  %v296_v7 = vsub.f32 %v1601_v62, %v280_v4  ;;  %345 = vadd.xlane.f32.xlu1 %v1676_v59  ;;  %343 = vadd.xlane.f32.xlu0 %v1678_v55 }
 0x149   :  { %1306 = vpow2.f32 %v323_v60  ;;  %1168 = vmatprep.subr.bf16.mxu0 %v518_v8 }
 0x14a   :  { %v1695_v62 = vpop.eup %1296  ;;  %v327_v11 = vmul.f32 1.442695, %v296_v7 }
 0x14b   :  { %v1697_v12 = vpop.eup %1298  ;;  %1169 = vmatpush3.bf16.msra.mxu0 %v518_v8 }
 0x14c   :  { %1308 = vpow2.f32 %v327_v11  ;;  %349 = vadd.xlane.f32.xlu1 %v1695_v62  ;;  %347 = vadd.xlane.f32.xlu0 %v1697_v12 }
 0x14d   :  { %1170 = vmatprep.subr.bf16.mxu0 %v519_v23 }
 0x14e   :  { %v1711_v19 = vpop.eup %1300 }
 0x14f   :  { %v1715_v21 = vpop.eup %1302  ;;  %1171 = vmatpush3.bf16.msra.mxu0 %v519_v23 }
 0x150   :  { %353 = vadd.xlane.f32.xlu1 %v1711_v19  ;;  %351 = vadd.xlane.f32.xlu0 %v1715_v21 }
 0x151   :  { %1172 = vmatprep.subr.bf16.mxu0 %v520_v28 }
 0x152   :  { %v1729_v27 = vpop.eup %1304 }
 0x153   :  { %v1733_v32 = vpop.eup %1306  ;;  %1173 = vmatpush3.bf16.msra.mxu0 %v520_v28 }
 0x154   :  { %357 = vadd.xlane.f32.xlu1 %v1729_v27  ;;  %355 = vadd.xlane.f32.xlu0 %v1733_v32 }
 0x155   :  { %1174 = vmatprep.subr.bf16.mxu0 %v521_v30 }
 0x156   :  { %v1747_v37 = vpop.eup %1308 }
 0x157   :  { %1175 = vmatpush3.bf16.msra.mxu0 %v521_v30 }
 0x158   :  { %359 = vadd.xlane.f32.xlu0 %v1747_v37  ;;  %1176 = vmatprep.subr.bf16.mxu0 %v522_v41 }
 0x15b   :  { %1177 = vmatpush3.bf16.msra.mxu0 %v522_v41 }
 0x1c4   :  { %v330_v44 = vpop.xlane.xlu1 %329 }
 0x1c5   :  { %vm361_vm0 = vcmp.gt.f32.partialorder %v330_v44, 0.0 }
 0x1c6   :  { %v377_v50 = vsel %vm361_vm0, %v330_v44, 1.0  ;;  %vm1090_vm0 = vcmask 261120  }
 0x1c7   :  { %1310 = vrcp.f32 %v377_v50 }
 0x1c8   :  { %v332_v52 = vpop.xlane.xlu0 %331 }
 0x1c9   :  { %v334_v49 = vpop.xlane.xlu1 %333  ;;  %vm362_vm1 = vcmp.gt.f32.partialorder %v332_v52, 0.0 }
 0x1ca   :  { %vm363_vm2 = vcmp.gt.f32.partialorder %v334_v49, 0.0  ;;  %v378_v53 = vsel %vm362_vm1, %v332_v52, 1.0 }
 0x1cb   :  { %v379_v58 = vsel %vm363_vm2, %v334_v49, 1.0  ;;  %1312 = vrcp.f32 %v378_v53 }
 0x1cc   :  { %1314 = vrcp.f32 %v379_v58 }
 0x1cd   :  { %v338_v17 = vpop.xlane.xlu1 %337  ;;  %v336_v60 = vpop.xlane.xlu0 %335 }
 0x1ce   :  { %vm365_vm3 = vcmp.gt.f32.partialorder %v338_v17, 0.0  ;;  %vm364_vm4 = vcmp.gt.f32.partialorder %v336_v60, 0.0 }
 0x1cf   :  { %v381_v4 = vsel %vm365_vm3, %v338_v17, 1.0  ;;  %v380_v7 = vsel %vm364_vm4, %v336_v60, 1.0 }
 0x1d0   :  { %1316 = vrcp.f32 %v381_v4 }
 0x1d1   :  { %v1311_v8 = vpop.eup %1310  ;;  %1318 = vrcp.f32 %v380_v7  ;;  %v342_v11 = vpop.xlane.xlu1 %341 }
 0x1d2   :  { %v340_v23 = vpop.xlane.xlu0 %339  ;;  %vm367_vm5 = vcmp.gt.f32.partialorder %v342_v11, 0.0  ;;  %v409_v28 = vmul.f32 %v1311_v8, %v1635_v61 }
 0x1d3   :  { %vm366_vm6 = vcmp.gt.f32.partialorder %v340_v23, 0.0  ;;  %v383_v30 = vsel %vm367_vm5, %v342_v11, 1.0 }
 0x1d4   :  { %v382_v41 = vsel %vm366_vm6, %v340_v23, 1.0  ;;  %1320 = vrcp.f32 %v383_v30  ;;  %v425_v44 = vmul.f32 %v409_v28, %v1449_v22 }
 0x1d5   :  { %v1313_v50 = vpop.eup %1312  ;;  %1322 = vrcp.f32 %v382_v41  ;;  %v346_v52 = vpop.xlane.xlu1 %345 }
 0x1d6   :  { %v344_v49 = vpop.xlane.xlu0 %343  ;;  %v1315_v53 = vpop.eup %1314  ;;  %vm369_vm7 = vcmp.gt.f32.partialorder %v346_v52, 0.0  ;;  %441 = vadd.xlane.f32.xlu1 %v425_v44  ;;  %v410_v58 = vmul.f32 %v1313_v50, %v1640_v3 }
 0x1d7   :  { %vm368_vm8 = vcmp.gt.f32.partialorder %v344_v49, 0.0  ;;  %v385_v17 = vsel %vm369_vm7, %v346_v52, 1.0  ;;  %v411_v4 = vmul.f32 %v1315_v53, %v1642_v20 }
 0x1d8   :  { %v384_v60 = vsel %vm368_vm8, %v344_v49, 1.0  ;;  %1324 = vrcp.f32 %v385_v17  ;;  %v1768_v61 = vpack.c.bf16 %v410_v58, %v409_v28  ;;  %v426_v7 = vmul.f32 %v410_v58, %v1462_v31 }
 0x1d9   :  { %1326 = vrcp.f32 %v384_v60  ;;  %v350_v22 = vpop.xlane.xlu1 %349  ;;  %v427_v11 = vmul.f32 %v411_v4, %v1454_v25 }
 0x1da   :  { %v348_v8 = vpop.xlane.xlu0 %347  ;;  %v1317_v23 = vpop.eup %1316  ;;  %vm371_vm9 = vcmp.gt.f32.partialorder %v350_v22, 0.0  ;;  %1178 = vmatprep.mubr.bf16.mxu0 %v1768_v61  ;;  %1210 = vmatprep.mubr.bf16.mxu1 %v1768_v61 }
 0x1db   :  { %vm370_vm10 = vcmp.gt.f32.partialorder %v348_v8, 0.0  ;;  %v1319_v3 = vpop.eup %1318  ;;  %v387_v30 = vsel %vm371_vm9, %v350_v22, 1.0  ;;  %445 = vadd.xlane.f32.xlu1 %v427_v11  ;;  %443 = vadd.xlane.f32.xlu0 %v426_v7  ;;  %v413_v28 = vmul.f32 %v1317_v23, %v1648_v26 }
 0x1dc   :  { %v386_v20 = vsel %vm370_vm10, %v348_v8, 1.0  ;;  %1328 = vrcp.f32 %v387_v30  ;;  %v412_v31 = vmul.f32 %v1319_v3, %v1650_v35 }
 0x1dd   :  { %1330 = vrcp.f32 %v386_v20  ;;  %v354_v41 = vpop.xlane.xlu1 %353  ;;  %v429_v44 = vmul.f32 %v413_v28, %v1479_v42 }
 0x1de   :  { %v352_v25 = vpop.xlane.xlu0 %351  ;;  %v1321_v50 = vpop.eup %1320  ;;  %vm373_vm11 = vcmp.gt.f32.partialorder %v354_v41, 0.0  ;;  %v1777_v52 = vpack.c.bf16 %v412_v31, %v411_v4  ;;  %v428_v49 = vmul.f32 %v412_v31, %v1468_v33 }
 0x1df   :  { %vm372_vm12 = vcmp.gt.f32.partialorder %v352_v25, 0.0  ;;  %v1323_v53 = vpop.eup %1322  ;;  %v389_v58 = vsel %vm373_vm11, %v354_v41, 1.0  ;;  %449 = vadd.xlane.f32.xlu1 %v429_v44  ;;  %v415_v26 = vmul.f32 %v1321_v50, %v1656_v39 }
 0x1e0   :  { %2433 = vst [vmem:[#allocation5_spill] sm:$0xff] %v1777_v52  ;;  %v388_v17 = vsel %vm372_vm12, %v352_v25, 1.0  ;;  %1332 = vrcp.f32 %v389_v58  ;;  %1179 = vmatmul.mubr.bf16.vlgmr.msra.gmra.mrb[0].mxu0 %v1777_v52  ;;  %447 = vadd.xlane.f32.xlu0 %v428_v49  ;;  %v414_v35 = vmul.f32 %v1323_v53, %v1658_v48 }
 0x1e1   :  { %1334 = vrcp.f32 %v388_v17  ;;  %v358_v42 = vpop.xlane.xlu1 %357  ;;  %v431_v4 = vmul.f32 %v415_v26, %v1499_v54 }
 0x1e2   :  { %v356_v60 = vpop.xlane.xlu0 %355  ;;  %v1325_v7 = vpop.eup %1324  ;;  %vm375_vm13 = vcmp.gt.f32.partialorder %v358_v42, 0.0  ;;  %v1784_v33 = vpack.c.bf16 %v414_v35, %v413_v28  ;;  %v430_v22 = vmul.f32 %v414_v35, %v1487_v45 }
 0x1e3   :  { %vm374_vm14 = vcmp.gt.f32.partialorder %v356_v60, 0.0  ;;  %v1327_v8 = vpop.eup %1326  ;;  %v391_v39 = vsel %vm375_vm13, %v358_v42, 1.0  ;;  %453 = vadd.xlane.f32.xlu1 %v431_v4  ;;  %v417_v23 = vmul.f32 %v1325_v7, %v1676_v59  ;;  %v1822_v4 = vstv %s497_s4 }
 0x1e4   :  { %2434 = vst [vmem:[#allocation6_spill] sm:$0xff] %v1784_v33  ;;  %v390_v11 = vsel %vm374_vm14, %v356_v60, 1.0  ;;  %1336 = vrcp.f32 %v391_v39  ;;  %1182 = vmatprep.mubr.bf16.mxu0 %v1784_v33  ;;  %451 = vadd.xlane.f32.xlu0 %v430_v22  ;;  %v416_v48 = vmul.f32 %v1327_v8, %v1678_v55  ;;  %v1828_v7 = vmul.f32 %v1822_v4, %v1617_v1 }
 0x1e5   :  { %1338 = vrcp.f32 %v390_v11  ;;  %v433_v3 = vmul.f32 %v417_v23, %v1519_v2  ;;  %v1840_v8 = vmul.f32 %v1822_v4, %v1612_v0 }
 0x1e6   :  { %v360_v54 = vpop.xlane.xlu0 %359  ;;  %v1329_v30 = vpop.eup %1328  ;;  %v1791_v20 = vpack.c.bf16 %v416_v48, %v415_v26  ;;  %v432_v45 = vmul.f32 %v416_v48, %v1507_v57  ;;  %2439 = vst [vmem:[#allocation11_spill] sm:$0xff] %v1828_v7 }
 0x1e7   :  { %vm376_vm15 = vcmp.gt.f32.partialorder %v360_v54, 0.0  ;;  %v1331_v28 = vpop.eup %1330  ;;  %457 = vadd.xlane.f32.xlu1 %v433_v3  ;;  %v419_v59 = vmul.f32 %v1329_v30, %v1695_v62  ;;  %2442 = vst [vmem:[#allocation14_spill] sm:$0xff] %v1840_v8 }
 0x1e8   :  { %2435 = vst [vmem:[#allocation7_spill] sm:$0xff] %v1791_v20  ;;  %v392_v31 = vsel %vm376_vm15, %v360_v54, 1.0  ;;  %1183 = vmatmul.mubr.bf16.gmra.mrb[4].mxu0 %v1791_v20  ;;  %455 = vadd.xlane.f32.xlu0 %v432_v45  ;;  %v418_v55 = vmul.f32 %v1331_v28, %v1697_v12 }
 0x1e9   :  { %1340 = vrcp.f32 %v392_v31  ;;  %v435_v41 = vmul.f32 %v419_v59, %v1539_v14 }
 0x1ea   :  { %v1333_v2 = vpop.eup %1332  ;;  %v1798_v25 = vpack.c.bf16 %v418_v55, %v417_v23  ;;  %v434_v44 = vmul.f32 %v418_v55, %v1527_v5 }
 0x1eb   :  { %v1335_v50 = vpop.eup %1334  ;;  %461 = vadd.xlane.f32.xlu1 %v435_v41  ;;  %v421_v57 = vmul.f32 %v1333_v2, %v1711_v19 }
 0x1ec   :  { %1186 = vmatprep.mubr.bf16.mxu0 %v1798_v25  ;;  %459 = vadd.xlane.f32.xlu0 %v434_v44  ;;  %v420_v62 = vmul.f32 %v1335_v50, %v1715_v21  ;;  %v1878_v44 = vmul.f32 %v1822_v4, %v1686_v9  ;;  %v1896_v9 = vmul.f32 %v1822_v4, %v1691_v10 }
 0x1ed   :  { %v437_v49 = vmul.f32 %v421_v57, %v1559_v29 }
 0x1ee   :  { %v1337_v53 = vpop.eup %1336  ;;  %v1805_v12 = vpack.c.bf16 %v420_v62, %v419_v59  ;;  %v436_v14 = vmul.f32 %v420_v62, %v1547_v18  ;;  %v1887_v62 = vmul.f32 %v1822_v4, %v1667_v43 }
 0x1ef   :  { %v1339_v58 = vpop.eup %1338  ;;  %465 = vadd.xlane.f32.xlu1 %v437_v49  ;;  %v423_v5 = vmul.f32 %v1337_v53, %v1729_v27 }
 0x1f0   :  { %2436 = vst [vmem:[#allocation8_spill] sm:$0xff] %v1805_v12  ;;  %1187 = vmatmul.mubr.bf16.gmra.mrb[8].mxu0 %v1805_v12  ;;  %463 = vadd.xlane.f32.xlu0 %v436_v14  ;;  %v422_v19 = vmul.f32 %v1339_v58, %v1733_v32 }
 0x1f1   :  { %v439_v17 = vmul.f32 %v423_v5, %v1574_v46 }
 0x1f2   :  { %v1812_v21 = vpack.c.bf16 %v422_v19, %v421_v57  ;;  %v438_v29 = vmul.f32 %v422_v19, %v1579_v47 }
 0x1f3   :  { %v1341_v26 = vpop.eup %1340  ;;  %469 = vadd.xlane.f32.xlu1 %v439_v17 }
 0x1f4   :  { %2437 = vst [vmem:[#allocation9_spill] sm:$0xff] %v1812_v21  ;;  %v424_v35 = vmul.f32 %v1341_v26, %v1747_v37  ;;  %1190 = vmatprep.mubr.bf16.mxu0 %v1812_v21  ;;  %467 = vadd.xlane.f32.xlu0 %v438_v29 }
 0x1f6   :  { %v1817_v18 = vpack.c.bf16 %v424_v35, %v423_v5  ;;  %v440_v27 = vmul.f32 %v424_v35, %v1592_v56  ;;  %v1832_v56 = vmul.f32 %v1822_v4, %v1607_v63 }
 0x1f8   :  { %2438 = vst [vmem:[#allocation10_spill] sm:$0xff] %v1817_v18  ;;  %1191 = vmatmul.mubr.bf16.gmra.mrb[12].mxu0 %v1817_v18  ;;  %471 = vadd.xlane.f32.xlu0 %v440_v27  ;;  %2440 = vst [vmem:[#allocation12_spill] sm:$0xff] %v1832_v56 }
 0x1f9   :  { %1242 = vmatprep.mubr.bf16.mxu0 %v1768_v61  ;;  %v1836_v61 = vmul.f32 %v1822_v4, %v1624_v6 }
 0x1fb   :  { %2441 = vst [vmem:[#allocation13_spill] sm:$0xff] %v1836_v61 }
 0x263   :  { %v442_v46 = vpop.xlane.xlu1 %441 }
 0x264   :  { %v1850_v63 = vmul.f32 0.5, %v442_v46 }
 0x268   :  { %v444_v32 = vpop.xlane.xlu0 %443  ;;  %v446_v42 = vpop.xlane.xlu1 %445 }
 0x269   :  { %v1844_v23 = vmul.f32 0.5, %v446_v42  ;;  %v1867_v31 = vmul.f32 0.5, %v444_v32 }
 0x26b   :  { %2443 = vst [vmem:[#allocation15_spill] sm:$0xff] %v1844_v23 }
 0x26c   :  { %v450_v60 = vpop.xlane.xlu1 %449 }
 0x26d   :  { %v448_v47 = vpop.xlane.xlu0 %447  ;;  %v1910_v29 = vmul.f32 0.5, %v450_v60 }
 0x26e   :  { %v1856_v3 = vmul.f32 0.5, %v448_v47 }
 0x26f   :  { %2444 = vst [vmem:[#allocation16_spill] sm:$0xff] %v1910_v29 }
 0x270   :  { %v454_v22 = vpop.xlane.xlu1 %453 }
 0x271   :  { %v1824_v37 = vpop.xlane.xlu0 %451  ;;  %v1904_v19 = vmul.f32 0.5, %v454_v22 }
 0x274   :  { %v458_v59 = vpop.xlane.xlu1 %457 }
 0x275   :  { %v456_v39 = vpop.xlane.xlu0 %455 }
 0x276   :  { %v1916_v46 = vmul.f32 0.5, %v456_v39 }
 0x278   :  { %v462_v10 = vpop.xlane.xlu1 %461  ;;  %2445 = vst [vmem:[#allocation17_spill] sm:$0xff] %v1916_v46 }
 0x279   :  { %v460_v49 = vpop.xlane.xlu0 %459 }
 0x27d   :  { %v464_v60 = vpop.xlane.xlu0 %463 }
 0x281   :  { %v1967_v58 = vpop.xlane.xlu0 %467 }
 0x282   :  { %2451 = vst [vmem:[#allocation23_spill] sm:$0xff] %v1967_v58  ;;  %v1984_v58 = vmul.f32 0.5, %v460_v49  ;;  %v2004_v49 = vmul.f32 %v1822_v4, %v1740_v34 }
 0x284   :  { %2456 = vst [vmem:[#allocation28_spill] sm:$0xff] %v2004_v49 }
 0x2b3   :  { %v1842_v11 = vpop.f32.mrb[0].mxu0 }
 0x2b4   :  { %v639_v1 = vadd.f32 %v1842_v11, %v1828_v7  ;;  %v1848_v48 = vpop.f32.mrb[1].mxu0 }
 0x2b5   :  { %v637_v6 = vadd.f32 %v1832_v56, %v1848_v48  ;;  %v1854_v54 = vpop.f32.mrb[2].mxu0 }
 0x2b6   :  { %v1859_v0 = vmul.f32 %v639_v1, %v1844_v23  ;;  %v640_v30 = vadd.f32 %v1854_v54, %v1836_v61  ;;  %v686_v45 = vpack.c.bf16 %v1854_v54, %v1842_v11  ;;  %v1865_v28 = vpop.f32.mrb[3].mxu0 }
 0x2b7   :  { %v1870_v55 = vmul.f32 %v637_v6, %v1850_v63  ;;  %v638_v41 = vadd.f32 %v1840_v8, %v1865_v28  ;;  %v685_v2 = vpack.c.bf16 %v1865_v28, %v1848_v48  ;;  %v1934_v6 = vmul.f32 %v1822_v4, %v1722_v15 }
 0x2b8   :  { %v1883_v57 = vmul.f32 %v640_v30, %v1856_v3  ;;  %v1973_v15 = vmul.f32 0.5, %v464_v60 }
 0x2b9   :  { %v1892_v14 = vmul.f32 %v638_v41, %v1867_v31  ;;  %1194 = vmatprep.subr.bf16.mxu1 %v685_v2 }
 0x2ba   :  { %1195 = vmatpush3.bf16.msra.mxu1 %v685_v2 }
 0x2bb   :  { %v1902_v5 = vpop.f32.mrb[4].mxu0  ;;  %1196 = vmatprep.subr.bf16.mxu1 %v686_v45 }
 0x2bc   :  { %v643_v17 = vadd.f32 %v1902_v5, %v1878_v44  ;;  %v1908_v26 = vpop.f32.mrb[5].mxu0 }
 0x2bd   :  { %v641_v35 = vadd.f32 %v1887_v62, %v1908_v26  ;;  %v1914_v27 = vpop.f32.mrb[6].mxu0 }
 0x2be   :  { %v1919_v32 = vmul.f32 %v643_v17, %v1904_v19  ;;  %v644_v42 = vadd.f32 %v1914_v27, %v1896_v9  ;;  %v688_v47 = vpack.c.bf16 %v1914_v27, %v1902_v5  ;;  %v1925_v22 = vpop.f32.mrb[7].mxu0  ;;  %1197 = vmatpush3.bf16.msra.mxu1 %v686_v45  ;;  %v1943_v45 = vmul.f32 %v1822_v4, %v1704_v13 }
 0x2bf   :  { %v1928_v1 = vmul.f32 %v641_v35, %v1910_v29  ;;  %v687_v39 = vpack.c.bf16 %v1925_v22, %v1908_v26  ;;  %v1949_v17 = vmul.f32 %v1822_v4, %v1727_v24  ;;  %v1955_v35 = vmul.f32 %v1822_v4, %v1709_v16 }
 0x2c0   :  { %v1939_v41 = vmul.f32 %v644_v42, %v1916_v46  ;;  %2446 = vst [vmem:[#allocation18_spill] sm:$0xff] %v1943_v45  ;;  %v466_v42 = vpop.xlane.xlu1 %465  ;;  %v1959_v13 = vmul.f32 0.5, %v462_v10  ;;  %v1965_v24 = vmul.f32 0.5, %v458_v59 }
 0x2c1   :  { %1198 = vmatprep.subr.bf16.mxu1 %v687_v39  ;;  %2447 = vst [vmem:[#allocation19_spill] sm:$0xff] %v1949_v17  ;;  %2448 = vst [vmem:[#allocation20_spill] sm:$0xff] %v1955_v35 }
 0x2c2   :  { %1199 = vmatpush3.bf16.msra.mxu1 %v687_v39  ;;  %2449 = vst [vmem:[#allocation21_spill] sm:$0xff] %v1959_v13  ;;  %2450 = vst [vmem:[#allocation22_spill] sm:$0xff] %v1965_v24 }
 0x2c3   :  { %v1957_v30 = vpop.f32.mrb[8].mxu0  ;;  %1200 = vmatprep.subr.bf16.mxu1 %v688_v47 }
 0x2c4   :  { %v647_v2 = vadd.f32 %v1957_v30, %v1934_v6  ;;  %v1963_v43 = vpop.f32.mrb[9].mxu0 }
 0x2c5   :  { %v645_v39 = vadd.f32 %v1943_v45, %v1963_v43  ;;  %v1971_v16 = vpop.f32.mrb[10].mxu0 }
 0x2c6   :  { %v1976_v53 = vmul.f32 %v647_v2, %v1959_v13  ;;  %v648_v10 = vadd.f32 %v1971_v16, %v1949_v17  ;;  %v690_v50 = vpack.c.bf16 %v1971_v16, %v1957_v30  ;;  %v1982_v59 = vpop.f32.mrb[11].mxu0  ;;  %1201 = vmatpush3.bf16.msra.mxu1 %v688_v47  ;;  %v1995_v17 = vmul.f32 %v1822_v4, %v1755_v36  ;;  %v472_v13 = vpop.xlane.xlu0 %471 }
 0x2c7   :  { %v1987_v45 = vmul.f32 %v645_v39, %v1965_v24  ;;  %v646_v60 = vadd.f32 %v1955_v35, %v1982_v59  ;;  %v689_v2 = vpack.c.bf16 %v1982_v59, %v1963_v43  ;;  %v470_v39 = vpop.xlane.xlu1 %469  ;;  %v2013_v36 = vmul.f32 %v1822_v4, %v1760_v40 }
 0x2c8   :  { %2452 = vst [vmem:[#allocation24_spill] sm:$0xff] %v1976_v53  ;;  %2454 = vst [vmem:[#allocation26_spill] sm:$0xff] %v1995_v17  ;;  %v2000_v47 = vmul.f32 %v648_v10, %v1973_v15  ;;  %v2021_v35 = vmul.f32 0.5, %v470_v39  ;;  %v2027_v40 = vmul.f32 0.5, %v466_v42 }
 0x2c9   :  { %2453 = vst [vmem:[#allocation25_spill] sm:$0xff] %v1987_v45  ;;  %v2009_v24 = vmul.f32 %v646_v60, %v1984_v58  ;;  %1202 = vmatprep.subr.bf16.mxu1 %v689_v2  ;;  %2458 = vst [vmem:[#allocation30_spill] sm:$0xff] %v2013_v36 }
 0x2ca   :  { %2455 = vst [vmem:[#allocation27_spill] sm:$0xff] %v2000_v47  ;;  %1203 = vmatpush3.bf16.msra.mxu1 %v689_v2  ;;  %2459 = vst [vmem:[#allocation31_spill] sm:$0xff] %v2021_v35  ;;  %v2033_v47 = vmul.f32 0.5, %v472_v13 }
 0x2cb   :  { %2457 = vst [vmem:[#allocation29_spill] sm:$0xff] %v2009_v24  ;;  %v2019_v53 = vpop.f32.mrb[12].mxu0  ;;  %1204 = vmatprep.subr.bf16.mxu1 %v690_v50 }
 0x2cc   :  { %v651_v60 = vadd.f32 %v2019_v53, %v1995_v17  ;;  %v2025_v45 = vpop.f32.mrb[13].mxu0 }
 0x2cd   :  { %v649_v10 = vadd.f32 %v2004_v49, %v2025_v45  ;;  %v2031_v2 = vpop.f32.mrb[14].mxu0 }
 0x2ce   :  { %v2036_v34 = vmul.f32 %v651_v60, %v2021_v35  ;;  %v652_v39 = vadd.f32 %v2031_v2, %v2013_v36  ;;  %v692_v17 = vpack.c.bf16 %v2031_v2, %v2019_v53  ;;  %v2042_v24 = vpop.f32.mrb[15].mxu0  ;;  %1205 = vmatpush3.bf16.msra.mxu1 %v690_v50 }
 0x2cf   :  { %v2045_v42 = vmul.f32 %v649_v10, %v2027_v40  ;;  %v691_v49 = vpack.c.bf16 %v2042_v24, %v2025_v45  ;;  %v2067_v10 = vstv %s1113_s9 }
 0x2d0   :  { %v2052_v60 = vmul.f32 %v652_v39, %v2033_v47  ;;  %v2071_v39 = vmul.f32 %v1822_v4, %v1672_v51  ;;  %v2462_v51 = vsub.f32 %v1842_v11, %v1859_v0 }
 0x2d1   :  { %1206 = vmatprep.subr.bf16.mxu1 %v691_v49 }
 0x2d2   :  { %2460 = vst [vmem:[#allocation32_spill] sm:$0xff] %v2052_v60  ;;  %1207 = vmatpush3.bf16.msra.mxu1 %v691_v49  ;;  %2461 = vst [vmem:[#allocation33_spill] sm:$0xff] %v2071_v39 }
 0x2d3   :  { %1208 = vmatprep.subr.bf16.mxu1 %v692_v17 }
 0x2d6   :  { %1209 = vmatpush3.bf16.msra.mxu1 %v692_v17 }
 0x2d9   :  { %1211 = vmatmul.mubr.bf16.vlgmr.msra.gmra.mrb[0].mxu1 %v1777_v52  ;;  %v841_v52 = vmul.f32 %v2067_v10, %v2462_v51 }
 0x2da   :  { %1214 = vmatprep.mubr.bf16.mxu1 %v1784_v33 }
 0x2e1   :  { %1215 = vmatmul.mubr.bf16.gmra.mrb[4].mxu1 %v1791_v20 }
 0x2e2   :  { %1218 = vmatprep.mubr.bf16.mxu1 %v1798_v25 }
 0x2e9   :  { %1219 = vmatmul.mubr.bf16.gmra.mrb[8].mxu1 %v1805_v12 }
 0x2ea   :  { %1222 = vmatprep.mubr.bf16.mxu1 %v1812_v21  ;;  %v2076_v21 = vstv %s855_s10 }
 0x2f1   :  { %1223 = vmatmul.mubr.bf16.gmra.mrb[12].mxu1 %v1817_v18 }
 0x2f2   :  { %1250 = vmatprep.mubr.bf16.mxu1 %v1798_v25 }
 0x3ac   :  { %v1212_v50 = vpop.f32.mrb[0].mxu1 }
 0x3ad   :  { %v792_v17 = vadd.f32 %v1212_v50, %v1828_v7  ;;  %v727_v49 = vpop.f32.mrb[1].mxu1 }
 0x3ae   :  { %v790_v35 = vadd.f32 %v727_v49, %v1832_v56  ;;  %v1213_v36 = vpop.f32.mrb[2].mxu1 }
 0x3af   :  { %v808_v13 = vmul.f32 %v792_v17, %v1844_v23  ;;  %v793_v18 = vadd.f32 %v1213_v36, %v1836_v61  ;;  %v890_v25 = vpack.c.bf16 %v1213_v36, %v1212_v50  ;;  %v730_v20 = vpop.f32.mrb[3].mxu1  ;;  %v642_v17 = vadd.f32 %v2071_v39, %v1925_v22 }
 0x3b0   :  { %v806_v7 = vmul.f32 %v790_v35, %v1850_v63  ;;  %v791_v33 = vadd.f32 %v730_v20, %v1840_v8  ;;  %v889_v12 = vpack.c.bf16 %v730_v20, %v727_v49  ;;  %v2463_v35 = vsub.f32 %v1848_v48, %v1870_v55 }
 0x3b1   :  { %v824_v56 = vsub.f32 %v1212_v50, %v808_v13  ;;  %v809_v60 = vmul.f32 %v793_v18, %v1856_v3  ;;  %v2094_v18 = vmul.f32 0.5, %v1824_v37 }
 0x3b2   :  { %v822_v61 = vsub.f32 %v727_v49, %v806_v7  ;;  %v807_v23 = vmul.f32 %v791_v33, %v1867_v31  ;;  %1226 = vmatprep.subr.bf16.mxu0 %v889_v12  ;;  %1258 = vmatprep.subr.bf16.mxu1 %v889_v12  ;;  %v839_v8 = vmul.f32 %v2067_v10, %v2463_v35 }
 0x3b3   :  { %v859_v11 = vmul.f32 %v2076_v21, %v824_v56  ;;  %v825_v0 = vsub.f32 %v1213_v36, %v809_v60  ;;  %1227 = vmatpush3.bf16.msra.mxu0 %v889_v12  ;;  %1266 = vmatpush3.bf16.msra.mxu1 %v889_v12  ;;  %2464 = vst [vmem:[#allocation34_spill] sm:$0xff] %v2094_v18 }
 0x3b4   :  { %v2465_v7 = vsub.f32 %v1854_v54, %v1883_v57  ;;  %v857_v13 = vmul.f32 %v2076_v21, %v822_v61  ;;  %v823_v50 = vsub.f32 %v730_v20, %v807_v23  ;;  %v1216_v49 = vpop.f32.mrb[4].mxu1  ;;  %1228 = vmatprep.subr.bf16.mxu0 %v890_v25  ;;  %1259 = vmatprep.subr.bf16.mxu1 %v890_v25 }
 0x3b5   :  { %v2466_v56 = vsub.f32 %v1865_v28, %v1892_v14  ;;  %v2105_v12 = vadd.f32 %v859_v11, %v841_v52  ;;  %v860_v37 = vmul.f32 %v2076_v21, %v825_v0  ;;  %v796_v55 = vadd.f32 %v1216_v49, %v1878_v44  ;;  %v743_v54 = vpop.f32.mrb[5].mxu1 }
 0x3b6   :  { %v842_v33 = vmul.f32 %v2067_v10, %v2465_v7  ;;  %v658_v57 = vmul.f32 %v642_v17, %v2094_v18  ;;  %v2110_v36 = vadd.f32 %v857_v13, %v839_v8  ;;  %v858_v20 = vmul.f32 %v2076_v21, %v823_v50  ;;  %v1217_v23 = vpop.f32.mrb[6].mxu1 }
 0x3b7   :  { %v840_v48 = vmul.f32 %v2067_v10, %v2466_v56  ;;  %v794_v61 = vadd.f32 %v743_v54, %v1887_v62  ;;  %v812_v28 = vmul.f32 %v796_v55, %v1904_v19  ;;  %v797_v52 = vadd.f32 %v1217_v23, %v1896_v9  ;;  %v746_v51 = vpop.f32.mrb[7].mxu1  ;;  %1229 = vmatpush3.bf16.msra.mxu0 %v890_v25 }
 0x3b8   :  { %v2114_v60 = vadd.f32 %v860_v37, %v842_v33  ;;  %v892_v14 = vpack.c.bf16 %v1217_v23, %v1216_v49  ;;  %v795_v8 = vadd.f32 %v746_v51, %v2071_v39  ;;  %v891_v11 = vpack.c.bf16 %v746_v51, %v743_v54  ;;  %1267 = vmatpush3.bf16.msra.mxu1 %v890_v25 }
 0x3b9   :  { %v2118_v35 = vadd.f32 %v858_v20, %v840_v48  ;;  %v810_v17 = vmul.f32 %v794_v61, %v1910_v29  ;;  %v828_v0 = vsub.f32 %v1216_v49, %v812_v28  ;;  %v813_v7 = vmul.f32 %v797_v52, %v1916_v46  ;;  %v2470_v52 = vld [vmem:[#allocation18_spill] sm:$0xff]  ;;  %v2486_v46 = vld [vmem:[#allocation31_spill] sm:$0xff] }
 0x3ba   :  { %v674_v33 = vsub.f32 %v1925_v22, %v658_v57  ;;  %v811_v50 = vmul.f32 %v795_v8, %v2094_v18  ;;  %1230 = vmatprep.subr.bf16.mxu0 %v891_v11  ;;  %1260 = vmatprep.subr.bf16.mxu1 %v891_v11  ;;  %v2467_v56 = vsub.f32 %v1902_v5, %v1919_v32 }
 0x3bb   :  { %v826_v13 = vsub.f32 %v743_v54, %v810_v17  ;;  %v2131_v37 = vmul.f32 %v1822_v4, %v1745_v38  ;;  %v863_v25 = vmul.f32 %v2076_v21, %v828_v0  ;;  %v829_v49 = vsub.f32 %v1217_v23, %v813_v7  ;;  %1231 = vmatpush3.bf16.msra.mxu0 %v891_v11 }
 0x3bc   :  { %v845_v48 = vmul.f32 %v2067_v10, %v2467_v56  ;;  %v2468_v22 = vsub.f32 %v1908_v26, %v1928_v1  ;;  %v827_v57 = vsub.f32 %v746_v51, %v811_v50  ;;  %1268 = vmatpush3.bf16.msra.mxu1 %v891_v11  ;;  %v1220_v5 = vpop.f32.mrb[8].mxu1  ;;  %1232 = vmatprep.subr.bf16.mxu0 %v892_v14  ;;  %v2472_v11 = vld [vmem:[#allocation19_spill] sm:$0xff]  ;;  %v2473_v56 = vld [vmem:[#allocation22_spill] sm:$0xff] }
 0x3bd   :  { %v861_v54 = vmul.f32 %v2076_v21, %v826_v13  ;;  %v2469_v32 = vsub.f32 %v1914_v27, %v1939_v41  ;;  %v864_v20 = vmul.f32 %v2076_v21, %v829_v49  ;;  %v800_v61 = vadd.f32 %v1220_v5, %v1934_v6  ;;  %1261 = vmatprep.subr.bf16.mxu1 %v892_v14  ;;  %v759_v26 = vpop.f32.mrb[9].mxu1  ;;  %v2471_v41 = vld [vmem:[#allocation21_spill] sm:$0xff] }
 0x3be   :  { %v843_v55 = vmul.f32 %v2067_v10, %v2468_v22  ;;  %v2143_v4 = vadd.f32 %v863_v25, %v845_v48  ;;  %v844_v1 = vmul.f32 %v2067_v10, %v674_v33  ;;  %v862_v28 = vmul.f32 %v2076_v21, %v827_v57  ;;  %v1221_v17 = vpop.f32.mrb[10].mxu1  ;;  %v2474_v48 = vld [vmem:[#allocation20_spill] sm:$0xff] }
 0x3bf   :  { %v846_v38 = vmul.f32 %v2067_v10, %v2469_v32  ;;  %v798_v51 = vadd.f32 %v759_v26, %v2470_v52  ;;  %v816_v8 = vmul.f32 %v800_v61, %v2471_v41  ;;  %v801_v0 = vadd.f32 %v1221_v17, %v2472_v11  ;;  %v762_v13 = vpop.f32.mrb[11].mxu1  ;;  %1233 = vmatpush3.bf16.msra.mxu0 %v892_v14 }
 0x3c0   :  { %v2148_v23 = vadd.f32 %v861_v54, %v843_v55  ;;  %v894_v7 = vpack.c.bf16 %v1221_v17, %v1220_v5  ;;  %v2156_v50 = vadd.f32 %v862_v28, %v844_v1  ;;  %v799_v25 = vadd.f32 %v762_v13, %v2474_v48  ;;  %1269 = vmatpush3.bf16.msra.mxu1 %v892_v14  ;;  %v2477_v1 = vld [vmem:[#allocation25_spill] sm:$0xff] }
 0x3c1   :  { %v2152_v27 = vadd.f32 %v864_v20, %v846_v38  ;;  %v814_v33 = vmul.f32 %v798_v51, %v2473_v56  ;;  %v893_v49 = vpack.c.bf16 %v762_v13, %v759_v26  ;;  %v832_v22 = vsub.f32 %v1220_v5, %v816_v8  ;;  %v2475_v38 = vld [vmem:[#allocation24_spill] sm:$0xff]  ;;  %v2479_v8 = vld [vmem:[#allocation23_spill] sm:$0xff] }
 0x3c2   :  { %v817_v55 = vmul.f32 %v801_v0, %v1973_v15  ;;  %v650_v54 = vadd.f32 %v2131_v37, %v2042_v24  ;;  %v815_v32 = vmul.f32 %v799_v25, %v1984_v58  ;;  %v2476_v20 = vsub.f32 %v1957_v30, %v2475_v38  ;;  %v2480_v0 = vld [vmem:[#allocation27_spill] sm:$0xff] }
 0x3c3   :  { %v830_v57 = vsub.f32 %v759_v26, %v814_v33  ;;  %1234 = vmatprep.subr.bf16.mxu0 %v893_v49  ;;  %1262 = vmatprep.subr.bf16.mxu1 %v893_v49  ;;  %v2478_v28 = vsub.f32 %v1963_v43, %v2477_v1  ;;  %v867_v5 = vmul.f32 %v2076_v21, %v832_v22  ;;  %v2174_v26 = vmul.f32 0.5, %v2479_v8  ;;  %v2482_v43 = vld [vmem:[#allocation29_spill] sm:$0xff] }
 0x3c4   :  { %v849_v61 = vmul.f32 %v2067_v10, %v2476_v20  ;;  %v833_v51 = vsub.f32 %v1221_v17, %v817_v55  ;;  %1235 = vmatpush3.bf16.msra.mxu0 %v893_v49  ;;  %v2481_v33 = vsub.f32 %v1971_v16, %v2480_v0  ;;  %v831_v38 = vsub.f32 %v762_v13, %v815_v32  ;;  %v1224_v20 = vpop.f32.mrb[12].mxu1 }
 0x3c5   :  { %v847_v14 = vmul.f32 %v2067_v10, %v2478_v28  ;;  %v865_v30 = vmul.f32 %v2076_v21, %v830_v57  ;;  %1270 = vmatpush3.bf16.msra.mxu1 %v893_v49  ;;  %1236 = vmatprep.subr.bf16.mxu0 %v894_v7  ;;  %v2483_v1 = vsub.f32 %v1982_v59, %v2482_v43  ;;  %v2484_v28 = vld [vmem:[#allocation26_spill] sm:$0xff]  ;;  %v775_v16 = vpop.f32.mrb[13].mxu1  ;;  %v2485_v49 = vld [vmem:[#allocation28_spill] sm:$0xff] }
 0x3c6   :  { %v850_v25 = vmul.f32 %v2067_v10, %v2481_v33  ;;  %v883_v22 = vadd.f32 %v867_v5, %v849_v61  ;;  %v868_v55 = vmul.f32 %v2076_v21, %v833_v51  ;;  %v804_v8 = vadd.f32 %v1224_v20, %v2484_v28  ;;  %1263 = vmatprep.subr.bf16.mxu1 %v894_v7  ;;  %v1225_v32 = vpop.f32.mrb[14].mxu1  ;;  %v2487_v43 = vld [vmem:[#allocation30_spill] sm:$0xff] }
 0x3c7   :  { %v848_v17 = vmul.f32 %v2067_v10, %v2483_v1  ;;  %v666_v0 = vmul.f32 %v650_v54, %v2174_v26  ;;  %v881_v33 = vadd.f32 %v865_v30, %v847_v14  ;;  %v866_v13 = vmul.f32 %v2076_v21, %v831_v38  ;;  %v778_v5 = vpop.f32.mrb[15].mxu1 }
 0x3c8   :  { %v802_v57 = vadd.f32 %v775_v16, %v2485_v49  ;;  %v884_v18 = vadd.f32 %v868_v55, %v850_v25  ;;  %v820_v59 = vmul.f32 %v804_v8, %v2486_v46  ;;  %v805_v1 = vadd.f32 %v1225_v32, %v2487_v43  ;;  %1237 = vmatpush3.bf16.msra.mxu0 %v894_v7 }
 0x3c9   :  { %v896_v61 = vpack.c.bf16 %v1225_v32, %v1224_v20  ;;  %v882_v51 = vadd.f32 %v866_v13, %v848_v17  ;;  %v803_v29 = vadd.f32 %v778_v5, %v2131_v37  ;;  %v895_v54 = vpack.c.bf16 %v778_v5, %v775_v16  ;;  %1271 = vmatpush3.bf16.msra.mxu1 %v894_v7 }
 0x3ca   :  { %v818_v39 = vmul.f32 %v802_v57, %v2027_v40  ;;  %v836_v14 = vsub.f32 %v1224_v20, %v820_v59  ;;  %v821_v30 = vmul.f32 %v805_v1, %v2033_v47  ;;  %v682_v38 = vsub.f32 %v2042_v24, %v666_v0 }
 0x3cb   :  { %v819_v55 = vmul.f32 %v803_v29, %v2174_v26  ;;  %1238 = vmatprep.subr.bf16.mxu0 %v895_v54  ;;  %1264 = vmatprep.subr.bf16.mxu1 %v895_v54  ;;  %v2488_v8 = vsub.f32 %v2019_v53, %v2036_v34  ;;  %v2489_v7 = vsub.f32 %v2025_v45, %v2045_v42  ;;  %v2490_v29 = vld [vmem:[#allocation32_spill] sm:$0xff] }
 0x3cc   :  { %v834_v25 = vsub.f32 %v775_v16, %v818_v39  ;;  %v871_v13 = vmul.f32 %v2076_v21, %v836_v14  ;;  %v837_v57 = vsub.f32 %v1225_v32, %v821_v30  ;;  %1239 = vmatpush3.bf16.msra.mxu0 %v895_v54  ;;  %v2491_v16 = vsub.f32 %v2031_v2, %v2490_v29  ;;  %v2494_v2 = vld [vmem:[#allocation6_spill] sm:$0xff]  ;;  %v2495_v14 = vld [vmem:[#allocation9_spill] sm:$0xff]  ;;  %v2496_v30 = vld [vmem:[#allocation7_spill] sm:$0xff] }
 0x3cd   :  { %v853_v17 = vmul.f32 %v2067_v10, %v2488_v8  ;;  %v851_v20 = vmul.f32 %v2067_v10, %v2489_v7  ;;  %v835_v39 = vsub.f32 %v778_v5, %v819_v55  ;;  %1272 = vmatpush3.bf16.msra.mxu1 %v895_v54  ;;  %1240 = vmatprep.subr.bf16.mxu0 %v896_v61  ;;  %v2492_v5 = vld [vmem:[#allocation5_spill] sm:$0xff]  ;;  %v2493_v54 = vld [vmem:[#allocation8_spill] sm:$0xff]  ;;  %v2498_v7 = vld [vmem:[#allocation11_spill] sm:$0xff] }
 0x3ce   :  { %v869_v24 = vmul.f32 %v2076_v21, %v834_v25  ;;  %v854_v53 = vmul.f32 %v2067_v10, %v2491_v16  ;;  %v872_v0 = vmul.f32 %v2076_v21, %v837_v57  ;;  %1265 = vmatprep.subr.bf16.mxu1 %v896_v61  ;;  %v852_v32 = vmul.f32 %v2067_v10, %v682_v38  ;;  %v2497_v25 = vld [vmem:[#allocation10_spill] sm:$0xff] }
 0x3cf   :  { %v887_v34 = vadd.f32 %v871_v13, %v853_v17  ;;  %v870_v45 = vmul.f32 %v2076_v21, %v835_v39  ;;  %v1044_v38 = vmul.f32 %v2105_v12, %v2067_v10  ;;  %v1042_v55 = vmul.f32 %v2110_v36, %v2067_v10 }
 0x3d0   :  { %v885_v59 = vadd.f32 %v869_v24, %v851_v20  ;;  %v888_v42 = vadd.f32 %v872_v0, %v854_v53  ;;  %1241 = vmatpush3.bf16.msra.mxu0 %v896_v61  ;;  %v2232_v8 = vmul.f32 %v2118_v35, %v2067_v10  ;;  %v2236_v17 = vmul.f32 %v2143_v4, %v2067_v10 }
 0x3d1   :  { %v2214_v1 = vadd.f32 %v870_v45, %v852_v32  ;;  %1273 = vmatpush3.bf16.msra.mxu1 %v896_v61  ;;  %v2228_v61 = vmul.f32 %v2114_v60, %v2067_v10  ;;  %v2240_v13 = vmul.f32 %v2148_v23, %v2067_v10  ;;  %v1052_v57 = vmul.f32 %v883_v22, %v2067_v10  ;;  %v2500_v32 = vld [vmem:[#allocation15_spill] sm:$0xff]  ;;  %v2501_v45 = vld [vmem:[#allocation13_spill] sm:$0xff] }
 0x3d2   :  { %v1050_v36 = vmul.f32 %v881_v33, %v2067_v10  ;;  %v2246_v60 = vmul.f32 %v2152_v27, %v2067_v10  ;;  %v2250_v35 = vmul.f32 %v2156_v50, %v2067_v10  ;;  %v1053_v23 = vmul.f32 %v884_v18, %v2067_v10  ;;  %v2499_v27 = vld [vmem:[#allocation12_spill] sm:$0xff] }
 0x3d3   :  { %1243 = vmatmul.mubr.bf16.vlgmr.msra.gmra.mrb[16].mxu0 %v2492_v5  ;;  %v2255_v39 = vmul.f32 %v882_v51, %v2067_v10  ;;  %v2258_v22 = vmul.f32 %v887_v34, %v2067_v10  ;;  %v2263_v50 = vmul.f32 %v885_v59, %v2067_v10  ;;  %v2266_v0 = vmul.f32 %v888_v42, %v2067_v10  ;;  %v2502_v59 = vld [vmem:[#allocation14_spill] sm:$0xff] }
 0x3d4   :  { %1251 = vmatmul.mubr.bf16.vlgmr.msra.gmra.mrb[16].mxu1 %v2493_v54  ;;  %1246 = vmatprep.mubr.bf16.mxu0 %v2494_v2 }
 0x3d5   :  { %1254 = vmatprep.mubr.bf16.mxu1 %v2495_v14 }
 0x3db   :  { %1247 = vmatmul.mubr.bf16.gmra.mrb[20].mxu0 %v2496_v30 }
 0x3dc   :  { %1255 = vmatmul.mubr.bf16.gmra.mrb[20].mxu1 %v2497_v25 }
 0x4a6   :  { %v1244_v12 = vpop.f32.mrb[16].mxu0 }
 0x4a7   :  { %v996_v4 = vadd.f32 %v1244_v12, %v2498_v7  ;;  %v1252_v20 = vpop.f32.mrb[16].mxu1  ;;  %v931_v24 = vpop.f32.mrb[17].mxu0 }
 0x4a8   :  { %v1004_v33 = vadd.f32 %v1252_v20, %v1934_v6  ;;  %v994_v29 = vadd.f32 %v931_v24, %v2499_v27  ;;  %v963_v16 = vpop.f32.mrb[17].mxu1  ;;  %v1245_v53 = vpop.f32.mrb[18].mxu0 }
 0x4a9   :  { %v1012_v18 = vmul.f32 %v996_v4, %v2500_v32  ;;  %v1002_v51 = vadd.f32 %v963_v16, %v2470_v52  ;;  %v997_v34 = vadd.f32 %v1245_v53, %v2501_v45  ;;  %v1253_v5 = vpop.f32.mrb[18].mxu1  ;;  %v934_v54 = vpop.f32.mrb[19].mxu0 }
 0x4aa   :  { %v1020_v6 = vmul.f32 %v1004_v33, %v2471_v41  ;;  %v1010_v2 = vmul.f32 %v994_v29, %v1850_v63  ;;  %v1005_v14 = vadd.f32 %v1253_v5, %v2472_v11  ;;  %v995_v30 = vadd.f32 %v934_v54, %v2502_v59  ;;  %v966_v25 = vpop.f32.mrb[19].mxu1 }
 0x4ab   :  { %v1028_v42 = vsub.f32 %v1244_v12, %v1012_v18  ;;  %v1018_v7 = vmul.f32 %v1002_v51, %v2473_v56  ;;  %v1013_v4 = vmul.f32 %v997_v34, %v1856_v3  ;;  %v1003_v52 = vadd.f32 %v966_v25, %v2474_v48 }
 0x4ac   :  { %v1036_v27 = vsub.f32 %v1252_v20, %v1020_v6  ;;  %v1026_v32 = vsub.f32 %v931_v24, %v1010_v2  ;;  %v1021_v45 = vmul.f32 %v1005_v14, %v1973_v15  ;;  %v1011_v41 = vmul.f32 %v995_v30, %v1867_v31 }
 0x4ad   :  { %v1060_v63 = vmul.f32 %v1028_v42, %v2076_v21  ;;  %v1034_v33 = vsub.f32 %v963_v16, %v1018_v7  ;;  %v1029_v11 = vsub.f32 %v1245_v53, %v1013_v4  ;;  %v1019_v29 = vmul.f32 %v1003_v52, %v1984_v58  ;;  %v2503_v7 = vld [vmem:[#allocation16_spill] sm:$0xff]  ;;  %v2504_v4 = vld [vmem:[#allocation33_spill] sm:$0xff] }
 0x4ae   :  { %v1068_v12 = vmul.f32 %v1036_v27, %v2076_v21  ;;  %v1058_v56 = vmul.f32 %v1026_v32, %v2076_v21  ;;  %v1037_v18 = vsub.f32 %v1253_v5, %v1021_v45  ;;  %v1027_v3 = vsub.f32 %v934_v54, %v1011_v41  ;;  %v1248_v51 = vpop.f32.mrb[20].mxu0  ;;  %v2505_v27 = vld [vmem:[#allocation17_spill] sm:$0xff] }
 0x4af   :  { %v1076_v48 = vadd.f32 %v1060_v63, %v1044_v38  ;;  %v1066_v20 = vmul.f32 %v1034_v33, %v2076_v21  ;;  %v1061_v15 = vmul.f32 %v1029_v11, %v2076_v21  ;;  %v1035_v24 = vsub.f32 %v966_v25, %v1019_v29  ;;  %v1256_v31 = vpop.f32.mrb[20].mxu1  ;;  %v947_v34 = vpop.f32.mrb[21].mxu0  ;;  %v2506_v33 = vld [vmem:[#allocation34_spill] sm:$0xff] }
 0x4b0   :  { %v1084_v6 = vadd.f32 %v1068_v12, %v1052_v57  ;;  %v1074_v16 = vadd.f32 %v1058_v56, %v1042_v55  ;;  %v1069_v53 = vmul.f32 %v1037_v18, %v2076_v21  ;;  %v1059_v58 = vmul.f32 %v1027_v3, %v2076_v21  ;;  %v979_v2 = vpop.f32.mrb[21].mxu1  ;;  %v1249_v14 = vpop.f32.mrb[22].mxu0 }
 0x4b1   :  { %1093 = vst.msk [vmem:[%s2394_s5 + $0x10] sm:$0xff] %vm1090_vm0, %v1076_v48  ;;  %v1082_v38 = vadd.f32 %v1066_v20, %v1050_v36  ;;  %v1077_v5 = vadd.f32 %v1061_v15, %v2228_v61  ;;  %v1067_v54 = vmul.f32 %v1035_v24, %v2076_v21  ;;  %v1000_v59 = vadd.f32 %v1248_v51, %v1878_v44  ;;  %v1257_v57 = vpop.f32.mrb[22].mxu1  ;;  %v950_v55 = vpop.f32.mrb[23].mxu0 }
 0x4b2   :  { %1101 = vst.msk [vmem:[%s2394_s5 + $0x50] sm:$0xff] %vm1090_vm0, %v1084_v6  ;;  %1091 = vst.msk [vmem:[%s2394_s5] sm:$0xff] %vm1090_vm0, %v1074_v16  ;;  %v1085_v30 = vadd.f32 %v1069_v53, %v1053_v23  ;;  %v1075_v36 = vadd.f32 %v1059_v58, %v2232_v8  ;;  %v1008_v61 = vadd.f32 %v1256_v31, %v2484_v28  ;;  %v982_v44 = vpop.f32.mrb[23].mxu1 }
 0x4b3   :  { %v998_v25 = vadd.f32 %v947_v34, %v1887_v62  ;;  %1099 = vst.msk [vmem:[%s2394_s5 + $0x40] sm:$0xff] %vm1090_vm0, %v1082_v38  ;;  %1094 = vst.msk [vmem:[%s2394_s5 + $0x18] sm:$0xff] %vm1090_vm0, %v1077_v5  ;;  %v1083_v42 = vadd.f32 %v1067_v54, %v2255_v39  ;;  %v1016_v23 = vmul.f32 %v1000_v59, %v1904_v19 }
 0x4b4   :  { %v1006_v8 = vadd.f32 %v979_v2, %v2485_v49  ;;  %v1001_v28 = vadd.f32 %v1249_v14, %v1896_v9  ;;  %1102 = vst.msk [vmem:[%s2394_s5 + $0x58] sm:$0xff] %vm1090_vm0, %v1085_v30  ;;  %1092 = vst.msk [vmem:[%s2394_s5 + $0x8] sm:$0xff] %vm1090_vm0, %v1075_v36  ;;  %v1024_v62 = vmul.f32 %v1008_v61, %v2486_v46 }
 0x4b5   :  { %v1014_v39 = vmul.f32 %v998_v25, %v2503_v7  ;;  %v1009_v19 = vadd.f32 %v1257_v57, %v2487_v43  ;;  %v999_v49 = vadd.f32 %v950_v55, %v2504_v4  ;;  %1100 = vst.msk [vmem:[%s2394_s5 + $0x48] sm:$0xff] %vm1090_vm0, %v1083_v42  ;;  %v1032_v9 = vsub.f32 %v1248_v51, %v1016_v23 }
 0x4b6   :  { %v1022_v52 = vmul.f32 %v1006_v8, %v2027_v40  ;;  %v1017_v32 = vmul.f32 %v1001_v28, %v2505_v27  ;;  %v1007_v45 = vadd.f32 %v982_v44, %v2131_v37  ;;  %v1040_v41 = vsub.f32 %v1256_v31, %v1024_v62 }
 0x4b7   :  { %v1030_v46 = vsub.f32 %v947_v34, %v1014_v39  ;;  %v1025_v63 = vmul.f32 %v1009_v19, %v2033_v47  ;;  %v1015_v43 = vmul.f32 %v999_v49, %v2506_v33  ;;  %v1064_v11 = vmul.f32 %v1032_v9, %v2076_v21 }
 0x4b8   :  { %v1038_v29 = vsub.f32 %v979_v2, %v1022_v52  ;;  %v1033_v12 = vsub.f32 %v1249_v14, %v1017_v32  ;;  %v1023_v56 = vmul.f32 %v1007_v45, %v2174_v26  ;;  %v1072_v18 = vmul.f32 %v1040_v41, %v2076_v21 }
 0x4b9   :  { %v1062_v40 = vmul.f32 %v1030_v46, %v2076_v21  ;;  %v1041_v3 = vsub.f32 %v1257_v57, %v1025_v63  ;;  %v1031_v51 = vsub.f32 %v950_v55, %v1015_v43  ;;  %v1080_v37 = vadd.f32 %v1064_v11, %v2236_v17 }
 0x4ba   :  { %v1070_v48 = vmul.f32 %v1038_v29, %v2076_v21  ;;  %v1065_v47 = vmul.f32 %v1033_v12, %v2076_v21  ;;  %v1039_v20 = vsub.f32 %v982_v44, %v1023_v56  ;;  %v1088_v15 = vadd.f32 %v1072_v18, %v2258_v22 }
 0x4bb   :  { %v1078_v24 = vadd.f32 %v1062_v40, %v2240_v13  ;;  %v1073_v31 = vmul.f32 %v1041_v3, %v2076_v21  ;;  %v1063_v26 = vmul.f32 %v1031_v51, %v2076_v21  ;;  %1097 = vst.msk [vmem:[%s2394_s5 + $0x30] sm:$0xff] %vm1090_vm0, %v1080_v37  ;;  %v1055_v6 = vmul.f32 %v2214_v1, %v2067_v10 }
 0x4bc   :  { %v1086_v17 = vadd.f32 %v1070_v48, %v2263_v50  ;;  %v1081_v34 = vadd.f32 %v1065_v47, %v2246_v60  ;;  %v1071_v22 = vmul.f32 %v1039_v20, %v2076_v21  ;;  %1105 = vst.msk [vmem:[%s2394_s5 + $0x70] sm:$0xff] %vm1090_vm0, %v1088_v15 }
 0x4bd   :  { %1095 = vst.msk [vmem:[%s2394_s5 + $0x20] sm:$0xff] %vm1090_vm0, %v1078_v24  ;;  %v1089_v13 = vadd.f32 %v1073_v31, %v2266_v0  ;;  %v1079_v50 = vadd.f32 %v1063_v26, %v2250_v35 }
 0x4be   :  { %1103 = vst.msk [vmem:[%s2394_s5 + $0x60] sm:$0xff] %vm1090_vm0, %v1086_v17  ;;  %1098 = vst.msk [vmem:[%s2394_s5 + $0x38] sm:$0xff] %vm1090_vm0, %v1081_v34  ;;  %v1087_v21 = vadd.f32 %v1071_v22, %v1055_v6 }
 0x4bf   :  { %1106 = vst.msk [vmem:[%s2394_s5 + $0x78] sm:$0xff] %vm1090_vm0, %v1089_v13  ;;  %1096 = vst.msk [vmem:[%s2394_s5 + $0x28] sm:$0xff] %vm1090_vm0, %v1079_v50 }
 0x4c0   :  { %1104 = vst.msk [vmem:[%s2394_s5 + $0x68] sm:$0xff] %vm1090_vm0, %v1087_v21 }
 0x4c1   :  { %1111 = vsyncpa [#allocation3], 1 }

</bundles_post_ra>
